<compile_context>
chip_gen: v5e
topology: v5e:2x2
jax: 0.10.0
libtpu: 0.0.40
codegen_flags: <defaults>
</compile_context>

<pallas_src>
import jax
import jax.numpy as jnp
from jax.experimental import pallas as pl
from jax.experimental.pallas import tpu as pltpu

ALPHA = 0.2            # LeakyReLU negative slope for GAT attention
NEG_INF = -9e15
_VMEM_LIMIT = 32 * 1024 * 1024   # explicit scoped-VMEM limit (raises v5e's 16 MiB default)


# ----------------------------------------------------------------------------
# Pallas kernel 1: multi-head GAT layer, tiled over query rows (grid axis 0).
# Per grid step (one tile of TQ query rows):
#   Wh_k  = x_all @ W            (N, H*Fout)   (key side, all nodes)
#   Wh_q  = x_q   @ W            (TQ, H*Fout)
#   f1    = Wh_q · a1_packedᵀ    (TQ, H)
#   f2    = a2_packed · Wh_kᵀ    (H, N)
#   per head h: e = leakyrelu(f1[:,h] + f2[h,:]) + mask_bias; softmax over keys;
#               out[:, h*Fout:(h+1)*Fout] = elu(attn @ Wh_k_head)
# ----------------------------------------------------------------------------
def _gat_kernel(xq_ref, xk_ref, w_ref, a1p_ref, a2p_ref, adj_ref, out_ref):
    H = a1p_ref.shape[0]
    HF = w_ref.shape[1]
    Fout = HF // H

    W = w_ref[...].astype(jnp.bfloat16)
    xq = xq_ref[...].astype(jnp.bfloat16)          # (TQ, Fin)
    xk = xk_ref[...].astype(jnp.bfloat16)          # (N, Fin) resident across steps

    # Key-side projection for ALL nodes.
    # TODO(synk): this (N,Fin)@(Fin,HF) is recomputed once per query tile (cheap
    # relative to the O(N^2) attention when Fin << 2*TQ); hoist into a producer
    # stage / persistent scratch if Fin grows large.
    wh_k = jnp.dot(xk, W, preferred_element_type=jnp.float32)        # (N, HF) f32
    wh_q = jnp.dot(xq, W, preferred_element_type=jnp.float32)        # (TQ, HF) f32

    a1p = a1p_ref[...]                                                # (H, HF) block-diag
    a2p = a2p_ref[...]                                                # (H, HF)
    f1 = jax.lax.dot_general(wh_q, a1p, (((1,), (1,)), ((), ())),
                             preferred_element_type=jnp.float32)      # (TQ, H)
    f2 = jax.lax.dot_general(a2p, wh_k, (((1,), (1,)), ((), ())),
                             preferred_element_type=jnp.float32)      # (H, N)

    # Additive adjacency-mask bias, hoisted out of the head loop: one
    # compare+select over TQxN instead of H of them.
    bias = jnp.where(adj_ref[...] > 0, 0.0, NEG_INF)                  # (TQ, N) f32

    wh_k_bf = wh_k.astype(jnp.bfloat16)
    for h in range(H):  # H is small & static; each head's (TQ,N) temporaries die at its store
        s = f1[:, h:h + 1] + f2[h:h + 1, :]                           # (TQ, N)
        e = jnp.maximum(s, ALPHA * s) + bias                          # LeakyReLU + mask
        e = e - jnp.max(e, axis=-1, keepdims=True)                    # stable softmax
        p = jnp.exp(e)
        # After max-subtraction the row-max exponent is exactly 1, so the
        # denominator is >= 1: an isolated node (no self-loop) yields a uniform
        # finite attention row rather than 0/0 = NaN.
        attn = p * pl.reciprocal(jnp.sum(p, axis=-1, keepdims=True), approx=True)
        hp = jnp.dot(attn.astype(jnp.bfloat16),
                     wh_k_bf[:, h * Fout:(h + 1) * Fout],
                     preferred_element_type=jnp.float32)              # (TQ, Fout)
        # ELU.  exp(x)-1 keeps a guaranteed Mosaic lowering; the low-order-bit loss
        # near 0 is negligible for this scorer.
        # TODO(synk): switch to jnp.expm1 once its TPU lowering is confirmed.
        elu = jnp.where(hp > 0, hp, jnp.exp(hp) - 1.0)
        # Direct per-head store (no concat) so each head's temporaries can retire.
        # TODO(synk): at production widths pad Fout to a multiple of 128 so this
        # store is lane-dense (unmasked vst).
        out_ref[:, h * Fout:(h + 1) * Fout] = elu


def _auto_block_q(n):
    for cand in (512, 256, 128, 64, 32, 16, 8):
        if cand <= n and n % cand == 0:
            return cand
    return n


def gat_multihead(x, W_all, a1_packed, a2_packed, adj, *, block_q=None):
    """x: (N, Fin), W_all: (Fin, H*Fout), a*_packed: (H, H*Fout), adj: (N, N) {0,1}
    -> (N, H*Fout) with per-head outputs concatenated along the feature/lane axis."""
    N, Fin = x.shape
    HF = W_all.shape[1]
    H = a1_packed.shape[0]
    if block_q is None:
        block_q = _auto_block_q(N)
    assert N % block_q == 0, (N, block_q)
    grid_n = N // block_q

    adj_c = adj.astype(jnp.bfloat16)      # halve the largest DMA (N^2 bytes) + VMEM footprint

    flops = int(2 * (grid_n + 1) * N * Fin * HF          # Wh_k per tile + Wh_q total
                + 4 * grid_n * N * H * HF                # f1 / f2 packed contractions
                + 2 * N * N * HF                         # attn @ Wh
                + 8 * N * N * H)                         # mask / leaky / softmax elementwise
    transcendentals = int(N * N * H + N * HF)            # exp (attn) + exp (ELU)
    bytes_accessed = int(4 * N * Fin * (grid_n + 1) + 4 * Fin * HF * grid_n
                         + 2 * N * N + 4 * N * HF + 8 * H * HF * grid_n)

    return pl.pallas_call(
        _gat_kernel,
        out_shape=jax.ShapeDtypeStruct((N, HF), jnp.float32),
        grid=(grid_n,),
        in_specs=[
            pl.BlockSpec((block_q, Fin), lambda i: (i, 0)),    # query rows of x
            pl.BlockSpec((N, Fin), lambda i: (0, 0)),          # all rows (keys), resident
            pl.BlockSpec((Fin, HF), lambda i: (0, 0)),         # fused weight, resident
            pl.BlockSpec((H, HF), lambda i: (0, 0)),
            pl.BlockSpec((H, HF), lambda i: (0, 0)),
            pl.BlockSpec((block_q, N), lambda i: (i, 0)),      # adjacency rows for the tile
        ],
        out_specs=pl.BlockSpec((block_q, HF), lambda i: (i, 0)),
        compiler_params=pltpu.CompilerParams(
            dimension_semantics=("parallel",),
            vmem_limit_bytes=_VMEM_LIMIT),
        cost_estimate=pl.CostEstimate(flops=flops,
                                      transcendentals=transcendentals,
                                      bytes_accessed=bytes_accessed),
    )(x, x, W_all, a1_packed, a2_packed, adj_c)


def _pack_attn(a):
    """(H, Fout) -> (H, H*Fout) block-diagonal rows: row h holds a[h] in cols [h*Fout,(h+1)*Fout)."""
    H, Fout = a.shape
    eye = jnp.eye(H, dtype=a.dtype)
    return (eye[:, :, None] * a[None, :, :]).reshape(H, H * Fout)


# ----------------------------------------------------------------------------
# Pallas kernel 2: fused TAT text encoder (head+tail stacked along batch) with the
# gated TransE score as an epilogue.
#   score[b,l] = <E[b,l], q[b]> ; masked softmax over l ; ctx = sum_l attn * E
#   txt = tanh(ctx @ Wt + bt)   (first B rows = head text, last B rows = tail text)
#   out = |sigmoid(gh)*hg + (1-sigmoid(gh))*head_text + r
#          - sigmoid(gt)*tg - (1-sigmoid(gt))*tail_text|
# ----------------------------------------------------------------------------
def _tat_score_kernel(emb_ref, mask_ref, q_ref, wt_ref, bt_ref,
                      hg_ref, tg_ref, r_ref, gh_ref, gt_ref, out_ref):
    E = emb_ref[...]                                  # (2B, L, D)
    mask = mask_ref[...]                              # (2B, L)
    q = q_ref[...]                                    # (2B, D)

    # TODO(synk): at production B*L*D, replace these broadcast-reduce patterns with
    # batched contractions ('bld,bd->bl' / 'bl,bld->bd') and gather the word
    # embeddings in-kernel (scalar-prefetched token ids + DMA gather) instead of
    # materializing E in HBM; at these tiny per-triple sizes the VPU form is the
    # safer lowering.
    scores = jnp.sum(E * q[:, None, :], axis=-1)                      # (2B, L)
    scores = jnp.where(mask > 0, scores, NEG_INF)
    scores = scores - jnp.max(scores, axis=-1, keepdims=True)
    p = jnp.exp(scores)
    # Denominator >= 1 after max-subtraction, so a zero-length sentence gives a
    # uniform finite attention rather than NaN.
    attn = p * pl.reciprocal(jnp.sum(p, axis=-1, keepdims=True), approx=True)
    ctx = jnp.sum(attn[:, :, None] * E, axis=1)                       # (2B, D)
    txt = jnp.tanh(
        jnp.dot(ctx.astype(jnp.bfloat16), wt_ref[...].astype(jnp.bfloat16),
                preferred_element_type=jnp.float32) + bt_ref[...])    # (2B, D)

    B = out_ref.shape[0]
    head_text = txt[:B]                               # (B, D)
    tail_text = txt[B:]                               # (B, D)

    gate_h = jax.nn.sigmoid(gh_ref[...])
    gate_t = jax.nn.sigmoid(gt_ref[...])
    head = gate_h * hg_ref[...] + (1.0 - gate_h) * head_text
    tail = gate_t * tg_ref[...] + (1.0 - gate_t) * tail_text
    out_ref[...] = jnp.abs(head + r_ref[...] - tail)


def tat_and_score(E_all, mask, q_all, tat_W, tat_b, hg, tg, r, gh, gt):
    B, D = hg.shape
    L = E_all.shape[1]
    vmem = pltpu.MemorySpace.VMEM
    flops = int(4 * 2 * B * L * D + 4 * B * D * D + 24 * B * D)
    transcendentals = int(2 * B * L + 6 * B * D)
    bytes_accessed = int(4 * (2 * B * L * D + 2 * B * L + 2 * B * D + D * D + D + 6 * B * D))
    return pl.pallas_call(
        _tat_score_kernel,
        out_shape=jax.ShapeDtypeStruct((B, D), jnp.float32),
        in_specs=[pl.BlockSpec(memory_space=vmem)] * 10,
        out_specs=pl.BlockSpec(memory_space=vmem),
        compiler_params=pltpu.CompilerParams(vmem_limit_bytes=_VMEM_LIMIT),
        cost_estimate=pl.CostEstimate(flops=flops,
                                      transcendentals=transcendentals,
                                      bytes_accessed=bytes_accessed),
    )(E_all, mask, q_all, tat_W, tat_b, hg, tg, r, gh, gt)


# ----------------------------------------------------------------------------
# Parameter init (deterministic, synthetic) and full GATA forward.
# ----------------------------------------------------------------------------
def init_params(key, emb_dim, hid_dim, out_dim, num_voc, num_heads, num_ent, num_rel):
    ks = jax.random.split(key, 12)
    s = 0.1
    return {
        "ent_emb":    s * jax.random.normal(ks[0], (num_ent, emb_dim), jnp.float32),
        "rel_emb":    s * jax.random.normal(ks[1], (num_rel, emb_dim), jnp.float32),
        "gate_emb":   s * jax.random.normal(ks[2], (num_ent, out_dim), jnp.float32),
        # Multi-head GAT weights stored pre-fused: (Fin, H*Fout).
        "gat_W":      s * jax.random.normal(ks[3], (emb_dim, num_heads * hid_dim), jnp.float32),
        "gat_a1":     s * jax.random.normal(ks[4], (num_heads, hid_dim), jnp.float32),
        "gat_a2":     s * jax.random.normal(ks[5], (num_heads, hid_dim), jnp.float32),
        "gat_out_W":  s * jax.random.normal(ks[6], (num_heads * hid_dim, emb_dim), jnp.float32),
        "gat_out_a1": s * jax.random.normal(ks[7], (1, emb_dim), jnp.float32),
        "gat_out_a2": s * jax.random.normal(ks[8], (1, emb_dim), jnp.float32),
        "word_emb":   s * jax.random.normal(ks[9], (num_voc, emb_dim), jnp.float32),
        "tat_W":      s * jax.random.normal(ks[10], (emb_dim, emb_dim), jnp.float32),
        "tat_b":      jnp.zeros((1, emb_dim), jnp.float32),
    }


def gata_forward(params, nodes, adj, pos, shifted_pos,
                 h_sents, h_order, h_lengths, t_sents, t_order, t_lengths,
                 block_q=None):
    emb_dim = params["ent_emb"].shape[1]
    # _score requires the gate embedding width (out_dim) to match emb_dim.
    assert params["gate_emb"].shape[1] == emb_dim, "out_dim must equal emb_dim for _score"

    # Embedding gathers stay in plain JAX (glue; XLA fuses them).
    node_features = params["ent_emb"][nodes]                             # (N, D)

    # GAT layer 1: all heads fused, query-row tiled, output in concat (N, H*nhid) layout.
    a1p = _pack_attn(params["gat_a1"])
    a2p = _pack_attn(params["gat_a2"])
    cat = gat_multihead(node_features, params["gat_W"], a1p, a2p, adj,
                        block_q=block_q)                                  # (N, H*nhid)

    # GAT output layer (single head, same tiled kernel with H=1).
    a1o = _pack_attn(params["gat_out_a1"])
    a2o = _pack_attn(params["gat_out_a2"])
    graph = gat_multihead(cat, params["gat_out_W"], a1o, a2o, adj,
                          block_q=block_q)                                # (N, D)

    head_idx = shifted_pos[:, 0]
    tail_idx = shifted_pos[:, 1]
    head_graph = graph[head_idx]                                          # (B, D)
    tail_graph = graph[tail_idx]
    head_nf = node_features[head_idx]
    tail_nf = node_features[tail_idx]

    # TODO(synk): `order` was used for pack_padded_sequence reordering in the original
    # (unavailable) TAT; attention pooling here masks by `lengths` only.
    del h_order, t_order

    B, L = h_sents.shape
    sents_all = jnp.concatenate([h_sents, t_sents], axis=0)              # (2B, L)
    lengths_all = jnp.concatenate([h_lengths, t_lengths], axis=0)        # (2B,)
    q_all = jnp.concatenate([head_nf, tail_nf], axis=0)                  # (2B, D)
    E_all = params["word_emb"][sents_all]                                # (2B, L, D)
    mask = (jnp.arange(L)[None, :] < lengths_all[:, None]).astype(jnp.float32)

    r_pos = params["rel_emb"][pos[:, 2]]
    gate_head = params["gate_emb"][pos[:, 0]]
    gate_tail = params["gate_emb"][pos[:, 1]]

    # One fused pallas_call: both text encoders + gated TransE score.
    return tat_and_score(E_all, mask, q_all, params["tat_W"], params["tat_b"],
                         head_graph, tail_graph, r_pos, gate_head, gate_tail)


if __name__ == "__main__":
    # Small, deterministic configuration.
    emb_dim, hid_dim, out_dim = 32, 16, 32    # out_dim must equal emb_dim for _score
    num_voc, num_heads = 50, 4
    num_ent, num_rel = 20, 5
    N, B, L = 16, 4, 8                        # subgraph nodes, triples, sentence length

    key = jax.random.PRNGKey(0)
    kp, k1, k2, k3, k4, k5, k6, k7, k8 = jax.random.split(key, 9)

    params = init_params(kp, emb_dim, hid_dim, out_dim,
                         num_voc, num_heads, num_ent, num_rel)

    nodes = jax.random.randint(k1, (N,), 0, num_ent)
    adj_rand = (jax.random.uniform(k2, (N, N)) > 0.6).astype(jnp.float32)
    adj = jnp.maximum(adj_rand, jnp.eye(N, dtype=jnp.float32))   # self loops
    pos = jnp.stack([
        jax.random.randint(k3, (B,), 0, num_ent),
        jax.random.randint(k4, (B,), 0, num_ent),
        jax.random.randint(k5, (B,), 0, num_rel),
    ], axis=1)                                                   # (B, 3)
    shifted_pos = jax.random.randint(k6, (B, 2), 0, N)           # local node indices
    h_sents = jax.random.randint(k7, (B, L), 0, num_voc)
    t_sents = jax.random.randint(k8, (B, L), 0, num_voc)
    h_lengths = jnp.array([8, 5, 3, 7], dtype=jnp.int32)
    t_lengths = jnp.array([4, 8, 6, 2], dtype=jnp.int32)
    h_order = jnp.arange(B, dtype=jnp.int32)
    t_order = jnp.arange(B, dtype=jnp.int32)

    fwd = jax.jit(gata_forward, static_argnames=("block_q",))
    # block_q=8 -> grid of 2 query tiles per GAT layer (exercises the pipeline/grid path).
    out = fwd(params, nodes, adj, pos, shifted_pos,
              h_sents, h_order, h_lengths,
              t_sents, t_order, t_lengths, block_q=8)
    out = jax.block_until_ready(out)
    assert out.shape == (B, out_dim)
    assert bool(jnp.all(jnp.isfinite(out)))
    print("KERNEL_OK")
</pallas_src>

<mosaic_0001>
module attributes {stable_mosaic.version = 11 : i64} {
  func.func @_gat_kernel(%arg0: i32, %arg1: memref<8x32xf32, #tpu.memory_space<vmem>>, %arg2: memref<16x32xf32, #tpu.memory_space<vmem>>, %arg3: memref<32x64xf32, #tpu.memory_space<vmem>>, %arg4: memref<4x64xf32, #tpu.memory_space<vmem>>, %arg5: memref<4x64xf32, #tpu.memory_space<vmem>>, %arg6: memref<8x16xbf16, #tpu.memory_space<vmem>>, %arg7: memref<8x64xf32, #tpu.memory_space<vmem>>) attributes {dimension_semantics = [#tpu.dimension_semantics<parallel>], iteration_bounds = array<i64: 2>, scalar_prefetch = 0 : i64, scratch_operands = 0 : i64, tpu.core_type = #tpu.core_type<tc>, window_params = [{transform_indices = @transform_0, window_bounds = array<i64: 8, 32>}, {pipeline_mode = #tpu.pipeline_mode<synchronous>, transform_indices = @transform_1, window_bounds = array<i64: 16, 32>}, {pipeline_mode = #tpu.pipeline_mode<synchronous>, transform_indices = @transform_2, window_bounds = array<i64: 32, 64>}, {pipeline_mode = #tpu.pipeline_mode<synchronous>, transform_indices = @transform_3, window_bounds = array<i64: 4, 64>}, {pipeline_mode = #tpu.pipeline_mode<synchronous>, transform_indices = @transform_4, window_bounds = array<i64: 4, 64>}, {transform_indices = @transform_5, window_bounds = array<i64: 8, 16>}, {transform_indices = @transform_6, window_bounds = array<i64: 8, 64>}]} {
    %c0 = arith.constant 0 : index
    %c0_0 = arith.constant 0 : index
    %0 = vector.load %arg3[%c0, %c0_0] : memref<32x64xf32, #tpu.memory_space<vmem>>, vector<32x64xf32>
    %1 = arith.truncf %0 : vector<32x64xf32> to vector<32x64xbf16>
    %c0_1 = arith.constant 0 : index
    %c0_2 = arith.constant 0 : index
    %2 = vector.load %arg1[%c0_1, %c0_2] : memref<8x32xf32, #tpu.memory_space<vmem>>, vector<8x32xf32>
    %3 = arith.truncf %2 : vector<8x32xf32> to vector<8x32xbf16>
    %c0_3 = arith.constant 0 : index
    %c0_4 = arith.constant 0 : index
    %4 = vector.load %arg2[%c0_3, %c0_4] : memref<16x32xf32, #tpu.memory_space<vmem>>, vector<16x32xf32>
    %5 = arith.truncf %4 : vector<16x32xf32> to vector<16x32xbf16>
    %cst = arith.constant dense<0.000000e+00> : vector<16x64xf32>
    %6 = tpu.matmul %5, %1, %cst {dimension_numbers = #tpu.dot_dimension_numbers<[1], [0], [0], [1], [0, 0, 1, 1], [], []>} : vector<16x32xbf16>, vector<32x64xbf16>, vector<16x64xf32> -> vector<16x64xf32>
    %cst_5 = arith.constant dense<0.000000e+00> : vector<8x64xf32>
    %7 = tpu.matmul %3, %1, %cst_5 {dimension_numbers = #tpu.dot_dimension_numbers<[1], [0], [0], [1], [0, 0, 1, 1], [], []>} : vector<8x32xbf16>, vector<32x64xbf16>, vector<8x64xf32> -> vector<8x64xf32>
    %c0_6 = arith.constant 0 : index
    %c0_7 = arith.constant 0 : index
    %8 = vector.load %arg4[%c0_6, %c0_7] : memref<4x64xf32, #tpu.memory_space<vmem>>, vector<4x64xf32>
    %c0_8 = arith.constant 0 : index
    %c0_9 = arith.constant 0 : index
    %9 = vector.load %arg5[%c0_8, %c0_9] : memref<4x64xf32, #tpu.memory_space<vmem>>, vector<4x64xf32>
    %cst_10 = arith.constant dense<0.000000e+00> : vector<8x4xf32>
    %10 = tpu.matmul %7, %8, %cst_10 {dimension_numbers = #tpu.dot_dimension_numbers<[1], [1], [0], [0], [0, 0, 1, 0], [], []>} : vector<8x64xf32>, vector<4x64xf32>, vector<8x4xf32> -> vector<8x4xf32>
    %cst_11 = arith.constant dense<0.000000e+00> : vector<4x16xf32>
    %11 = tpu.matmul %9, %6, %cst_11 {dimension_numbers = #tpu.dot_dimension_numbers<[1], [1], [0], [0], [0, 0, 1, 0], [], []>} : vector<4x64xf32>, vector<16x64xf32>, vector<4x16xf32> -> vector<4x16xf32>
    %c0_12 = arith.constant 0 : index
    %c0_13 = arith.constant 0 : index
    %12 = vector.load %arg6[%c0_12, %c0_13] : memref<8x16xbf16, #tpu.memory_space<vmem>>, vector<8x16xbf16>
    %cst_14 = arith.constant 0.000000e+00 : bf16
    %13 = vector.broadcast %cst_14 : bf16 to vector<8x16xbf16>
    %14 = arith.cmpf ogt, %12, %13 : vector<8x16xbf16>
    %cst_15 = arith.constant 0.000000e+00 : f32
    %cst_16 = arith.constant -9.000000e+15 : f32
    %15 = vector.broadcast %cst_15 : f32 to vector<8x16xf32>
    %16 = vector.broadcast %cst_16 : f32 to vector<8x16xf32>
    %17 = arith.select %14, %15, %16 : vector<8x16xi1>, vector<8x16xf32>
    %18 = arith.truncf %6 : vector<16x64xf32> to vector<16x64xbf16>
    %19 = vector.extract_strided_slice %10 {offsets = [0, 0], sizes = [8, 1], strides = [1, 1]} : vector<8x4xf32> to vector<8x1xf32>
    %20 = vector.extract_strided_slice %11 {offsets = [0, 0], sizes = [1, 16], strides = [1, 1]} : vector<4x16xf32> to vector<1x16xf32>
    %21 = vector.broadcast %19 : vector<8x1xf32> to vector<8x16xf32>
    %22 = vector.broadcast %20 : vector<1x16xf32> to vector<8x16xf32>
    %23 = arith.addf %21, %22 : vector<8x16xf32>
    %cst_17 = arith.constant 2.000000e-01 : f32
    %24 = vector.broadcast %cst_17 : f32 to vector<8x16xf32>
    %25 = arith.mulf %24, %23 : vector<8x16xf32>
    %26 = arith.maximumf %23, %25 : vector<8x16xf32>
    %27 = arith.addf %26, %17 : vector<8x16xf32>
    %cst_18 = arith.constant dense<0xFF800000> : vector<8xf32>
    %28 = vector.multi_reduction <maximumf>, %27, %cst_18 [1] : vector<8x16xf32> to vector<8xf32>
    %29 = vector.shape_cast %28 : vector<8xf32> to vector<8x1xf32>
    %30 = vector.broadcast %29 : vector<8x1xf32> to vector<8x16xf32>
    %31 = arith.subf %27, %30 : vector<8x16xf32>
    %32 = math.exp %31 : vector<8x16xf32>
    %cst_19 = arith.constant dense<0.000000e+00> : vector<8xf32>
    %33 = vector.multi_reduction <add>, %32, %cst_19 [1] : vector<8x16xf32> to vector<8xf32>
    %34 = vector.shape_cast %33 : vector<8xf32> to vector<8x1xf32>
    %35 = tpu.reciprocal %34 {approx = true} : vector<8x1xf32> -> vector<8x1xf32>
    %36 = vector.broadcast %35 : vector<8x1xf32> to vector<8x16xf32>
    %37 = arith.mulf %32, %36 : vector<8x16xf32>
    %38 = arith.truncf %37 : vector<8x16xf32> to vector<8x16xbf16>
    %39 = vector.extract_strided_slice %18 {offsets = [0, 0], sizes = [16, 16], strides = [1, 1]} : vector<16x64xbf16> to vector<16x16xbf16>
    %cst_20 = arith.constant dense<0.000000e+00> : vector<8x16xf32>
    %40 = tpu.matmul %38, %39, %cst_20 {dimension_numbers = #tpu.dot_dimension_numbers<[1], [0], [0], [1], [0, 0, 1, 1], [], []>} : vector<8x16xbf16>, vector<16x16xbf16>, vector<8x16xf32> -> vector<8x16xf32>
    %cst_21 = arith.constant 0.000000e+00 : f32
    %41 = vector.broadcast %cst_21 : f32 to vector<8x16xf32>
    %42 = arith.cmpf ogt, %40, %41 : vector<8x16xf32>
    %43 = math.exp %40 : vector<8x16xf32>
    %cst_22 = arith.constant 1.000000e+00 : f32
    %44 = vector.broadcast %cst_22 : f32 to vector<8x16xf32>
    %45 = arith.subf %43, %44 : vector<8x16xf32>
    %46 = arith.select %42, %40, %45 : vector<8x16xi1>, vector<8x16xf32>
    %c0_23 = arith.constant 0 : index
    %c0_24 = arith.constant 0 : index
    %47 = vector.load %arg7[%c0_23, %c0_24] : memref<8x64xf32, #tpu.memory_space<vmem>>, vector<8x16xf32>
    tpu.vector_store %arg7[%c0_23, %c0_24], %46 {strides = array<i32>} : memref<8x64xf32, #tpu.memory_space<vmem>>, vector<8x16xf32>,
    %48 = vector.extract_strided_slice %10 {offsets = [0, 1], sizes = [8, 1], strides = [1, 1]} : vector<8x4xf32> to vector<8x1xf32>
    %49 = vector.extract_strided_slice %11 {offsets = [1, 0], sizes = [1, 16], strides = [1, 1]} : vector<4x16xf32> to vector<1x16xf32>
    %50 = vector.broadcast %48 : vector<8x1xf32> to vector<8x16xf32>
    %51 = vector.broadcast %49 : vector<1x16xf32> to vector<8x16xf32>
    %52 = arith.addf %50, %51 : vector<8x16xf32>
    %cst_25 = arith.constant 2.000000e-01 : f32
    %53 = vector.broadcast %cst_25 : f32 to vector<8x16xf32>
    %54 = arith.mulf %53, %52 : vector<8x16xf32>
    %55 = arith.maximumf %52, %54 : vector<8x16xf32>
    %56 = arith.addf %55, %17 : vector<8x16xf32>
    %cst_26 = arith.constant dense<0xFF800000> : vector<8xf32>
    %57 = vector.multi_reduction <maximumf>, %56, %cst_26 [1] : vector<8x16xf32> to vector<8xf32>
    %58 = vector.shape_cast %57 : vector<8xf32> to vector<8x1xf32>
    %59 = vector.broadcast %58 : vector<8x1xf32> to vector<8x16xf32>
    %60 = arith.subf %56, %59 : vector<8x16xf32>
    %61 = math.exp %60 : vector<8x16xf32>
    %cst_27 = arith.constant dense<0.000000e+00> : vector<8xf32>
    %62 = vector.multi_reduction <add>, %61, %cst_27 [1] : vector<8x16xf32> to vector<8xf32>
    %63 = vector.shape_cast %62 : vector<8xf32> to vector<8x1xf32>
    %64 = tpu.reciprocal %63 {approx = true} : vector<8x1xf32> -> vector<8x1xf32>
    %65 = vector.broadcast %64 : vector<8x1xf32> to vector<8x16xf32>
    %66 = arith.mulf %61, %65 : vector<8x16xf32>
    %67 = arith.truncf %66 : vector<8x16xf32> to vector<8x16xbf16>
    %68 = vector.extract_strided_slice %18 {offsets = [0, 16], sizes = [16, 16], strides = [1, 1]} : vector<16x64xbf16> to vector<16x16xbf16>
    %cst_28 = arith.constant dense<0.000000e+00> : vector<8x16xf32>
    %69 = tpu.matmul %67, %68, %cst_28 {dimension_numbers = #tpu.dot_dimension_numbers<[1], [0], [0], [1], [0, 0, 1, 1], [], []>} : vector<8x16xbf16>, vector<16x16xbf16>, vector<8x16xf32> -> vector<8x16xf32>
    %cst_29 = arith.constant 0.000000e+00 : f32
    %70 = vector.broadcast %cst_29 : f32 to vector<8x16xf32>
    %71 = arith.cmpf ogt, %69, %70 : vector<8x16xf32>
    %72 = math.exp %69 : vector<8x16xf32>
    %cst_30 = arith.constant 1.000000e+00 : f32
    %73 = vector.broadcast %cst_30 : f32 to vector<8x16xf32>
    %74 = arith.subf %72, %73 : vector<8x16xf32>
    %75 = arith.select %71, %69, %74 : vector<8x16xi1>, vector<8x16xf32>
    %c0_31 = arith.constant 0 : index
    %c16 = arith.constant 16 : index
    %76 = vector.load %arg7[%c0_31, %c16] : memref<8x64xf32, #tpu.memory_space<vmem>>, vector<8x16xf32>
    tpu.vector_store %arg7[%c0_31, %c16], %75 {strides = array<i32>} : memref<8x64xf32, #tpu.memory_space<vmem>>, vector<8x16xf32>,
    %77 = vector.extract_strided_slice %10 {offsets = [0, 2], sizes = [8, 1], strides = [1, 1]} : vector<8x4xf32> to vector<8x1xf32>
    %78 = vector.extract_strided_slice %11 {offsets = [2, 0], sizes = [1, 16], strides = [1, 1]} : vector<4x16xf32> to vector<1x16xf32>
    %79 = vector.broadcast %77 : vector<8x1xf32> to vector<8x16xf32>
    %80 = vector.broadcast %78 : vector<1x16xf32> to vector<8x16xf32>
    %81 = arith.addf %79, %80 : vector<8x16xf32>
    %cst_32 = arith.constant 2.000000e-01 : f32
    %82 = vector.broadcast %cst_32 : f32 to vector<8x16xf32>
    %83 = arith.mulf %82, %81 : vector<8x16xf32>
    %84 = arith.maximumf %81, %83 : vector<8x16xf32>
    %85 = arith.addf %84, %17 : vector<8x16xf32>
    %cst_33 = arith.constant dense<0xFF800000> : vector<8xf32>
    %86 = vector.multi_reduction <maximumf>, %85, %cst_33 [1] : vector<8x16xf32> to vector<8xf32>
    %87 = vector.shape_cast %86 : vector<8xf32> to vector<8x1xf32>
    %88 = vector.broadcast %87 : vector<8x1xf32> to vector<8x16xf32>
    %89 = arith.subf %85, %88 : vector<8x16xf32>
    %90 = math.exp %89 : vector<8x16xf32>
    %cst_34 = arith.constant dense<0.000000e+00> : vector<8xf32>
    %91 = vector.multi_reduction <add>, %90, %cst_34 [1] : vector<8x16xf32> to vector<8xf32>
    %92 = vector.shape_cast %91 : vector<8xf32> to vector<8x1xf32>
    %93 = tpu.reciprocal %92 {approx = true} : vector<8x1xf32> -> vector<8x1xf32>
    %94 = vector.broadcast %93 : vector<8x1xf32> to vector<8x16xf32>
    %95 = arith.mulf %90, %94 : vector<8x16xf32>
    %96 = arith.truncf %95 : vector<8x16xf32> to vector<8x16xbf16>
    %97 = vector.extract_strided_slice %18 {offsets = [0, 32], sizes = [16, 16], strides = [1, 1]} : vector<16x64xbf16> to vector<16x16xbf16>
    %cst_35 = arith.constant dense<0.000000e+00> : vector<8x16xf32>
    %98 = tpu.matmul %96, %97, %cst_35 {dimension_numbers = #tpu.dot_dimension_numbers<[1], [0], [0], [1], [0, 0, 1, 1], [], []>} : vector<8x16xbf16>, vector<16x16xbf16>, vector<8x16xf32> -> vector<8x16xf32>
    %cst_36 = arith.constant 0.000000e+00 : f32
    %99 = vector.broadcast %cst_36 : f32 to vector<8x16xf32>
    %100 = arith.cmpf ogt, %98, %99 : vector<8x16xf32>
    %101 = math.exp %98 : vector<8x16xf32>
    %cst_37 = arith.constant 1.000000e+00 : f32
    %102 = vector.broadcast %cst_37 : f32 to vector<8x16xf32>
    %103 = arith.subf %101, %102 : vector<8x16xf32>
    %104 = arith.select %100, %98, %103 : vector<8x16xi1>, vector<8x16xf32>
    %c0_38 = arith.constant 0 : index
    %c32 = arith.constant 32 : index
    %105 = vector.load %arg7[%c0_38, %c32] : memref<8x64xf32, #tpu.memory_space<vmem>>, vector<8x16xf32>
    tpu.vector_store %arg7[%c0_38, %c32], %104 {strides = array<i32>} : memref<8x64xf32, #tpu.memory_space<vmem>>, vector<8x16xf32>,
    %106 = vector.extract_strided_slice %10 {offsets = [0, 3], sizes = [8, 1], strides = [1, 1]} : vector<8x4xf32> to vector<8x1xf32>
    %107 = vector.extract_strided_slice %11 {offsets = [3, 0], sizes = [1, 16], strides = [1, 1]} : vector<4x16xf32> to vector<1x16xf32>
    %108 = vector.broadcast %106 : vector<8x1xf32> to vector<8x16xf32>
    %109 = vector.broadcast %107 : vector<1x16xf32> to vector<8x16xf32>
    %110 = arith.addf %108, %109 : vector<8x16xf32>
    %cst_39 = arith.constant 2.000000e-01 : f32
    %111 = vector.broadcast %cst_39 : f32 to vector<8x16xf32>
    %112 = arith.mulf %111, %110 : vector<8x16xf32>
    %113 = arith.maximumf %110, %112 : vector<8x16xf32>
    %114 = arith.addf %113, %17 : vector<8x16xf32>
    %cst_40 = arith.constant dense<0xFF800000> : vector<8xf32>
    %115 = vector.multi_reduction <maximumf>, %114, %cst_40 [1] : vector<8x16xf32> to vector<8xf32>
    %116 = vector.shape_cast %115 : vector<8xf32> to vector<8x1xf32>
    %117 = vector.broadcast %116 : vector<8x1xf32> to vector<8x16xf32>
    %118 = arith.subf %114, %117 : vector<8x16xf32>
    %119 = math.exp %118 : vector<8x16xf32>
    %cst_41 = arith.constant dense<0.000000e+00> : vector<8xf32>
    %120 = vector.multi_reduction <add>, %119, %cst_41 [1] : vector<8x16xf32> to vector<8xf32>
    %121 = vector.shape_cast %120 : vector<8xf32> to vector<8x1xf32>
    %122 = tpu.reciprocal %121 {approx = true} : vector<8x1xf32> -> vector<8x1xf32>
    %123 = vector.broadcast %122 : vector<8x1xf32> to vector<8x16xf32>
    %124 = arith.mulf %119, %123 : vector<8x16xf32>
    %125 = arith.truncf %124 : vector<8x16xf32> to vector<8x16xbf16>
    %126 = vector.extract_strided_slice %18 {offsets = [0, 48], sizes = [16, 16], strides = [1, 1]} : vector<16x64xbf16> to vector<16x16xbf16>
    %cst_42 = arith.constant dense<0.000000e+00> : vector<8x16xf32>
    %127 = tpu.matmul %125, %126, %cst_42 {dimension_numbers = #tpu.dot_dimension_numbers<[1], [0], [0], [1], [0, 0, 1, 1], [], []>} : vector<8x16xbf16>, vector<16x16xbf16>, vector<8x16xf32> -> vector<8x16xf32>
    %cst_43 = arith.constant 0.000000e+00 : f32
    %128 = vector.broadcast %cst_43 : f32 to vector<8x16xf32>
    %129 = arith.cmpf ogt, %127, %128 : vector<8x16xf32>
    %130 = math.exp %127 : vector<8x16xf32>
    %cst_44 = arith.constant 1.000000e+00 : f32
    %131 = vector.broadcast %cst_44 : f32 to vector<8x16xf32>
    %132 = arith.subf %130, %131 : vector<8x16xf32>
    %133 = arith.select %129, %127, %132 : vector<8x16xi1>, vector<8x16xf32>
    %c0_45 = arith.constant 0 : index
    %c48 = arith.constant 48 : index
    %134 = vector.load %arg7[%c0_45, %c48] : memref<8x64xf32, #tpu.memory_space<vmem>>, vector<8x16xf32>
    tpu.vector_store %arg7[%c0_45, %c48], %133 {strides = array<i32>} : memref<8x64xf32, #tpu.memory_space<vmem>>, vector<8x16xf32>,
    return
  }
  func.func @transform_0(%arg0: i32) -> (i32, i32) {
    %c0_i32 = arith.constant 0 : i32
    %c0_i32_0 = arith.constant 0 : i32
    return %arg0, %c0_i32 : i32, i32
  }
  func.func @transform_1(%arg0: i32) -> (i32, i32) {
    %c0_i32 = arith.constant 0 : i32
    %c0_i32_0 = arith.constant 0 : i32
    %c0_i32_1 = arith.constant 0 : i32
    return %c0_i32, %c0_i32_0 : i32, i32
  }
  func.func @transform_2(%arg0: i32) -> (i32, i32) {
    %c0_i32 = arith.constant 0 : i32
    %c0_i32_0 = arith.constant 0 : i32
    %c0_i32_1 = arith.constant 0 : i32
    return %c0_i32, %c0_i32_0 : i32, i32
  }
  func.func @transform_3(%arg0: i32) -> (i32, i32) {
    %c0_i32 = arith.constant 0 : i32
    %c0_i32_0 = arith.constant 0 : i32
    %c0_i32_1 = arith.constant 0 : i32
    return %c0_i32, %c0_i32_0 : i32, i32
  }
  func.func @transform_4(%arg0: i32) -> (i32, i32) {
    %c0_i32 = arith.constant 0 : i32
    %c0_i32_0 = arith.constant 0 : i32
    %c0_i32_1 = arith.constant 0 : i32
    return %c0_i32, %c0_i32_0 : i32, i32
  }
  func.func @transform_5(%arg0: i32) -> (i32, i32) {
    %c0_i32 = arith.constant 0 : i32
    %c0_i32_0 = arith.constant 0 : i32
    return %arg0, %c0_i32 : i32, i32
  }
  func.func @transform_6(%arg0: i32) -> (i32, i32) {
    %c0_i32 = arith.constant 0 : i32
    %c0_i32_0 = arith.constant 0 : i32
    return %arg0, %c0_i32 : i32, i32
  }
}

module attributes {stable_mosaic.version = 11 : i64} {
  func.func @_gat_kernel(%arg0: i32, %arg1: memref<8x64xf32, #tpu.memory_space<vmem>>, %arg2: memref<16x64xf32, #tpu.memory_space<vmem>>, %arg3: memref<64x32xf32, #tpu.memory_space<vmem>>, %arg4: memref<1x32xf32, #tpu.memory_space<vmem>>, %arg5: memref<1x32xf32, #tpu.memory_space<vmem>>, %arg6: memref<8x16xbf16, #tpu.memory_space<vmem>>, %arg7: memref<8x32xf32, #tpu.memory_space<vmem>>) attributes {dimension_semantics = [#tpu.dimension_semantics<parallel>], iteration_bounds = array<i64: 2>, scalar_prefetch = 0 : i64, scratch_operands = 0 : i64, tpu.core_type = #tpu.core_type<tc>, window_params = [{transform_indices = @transform_0, window_bounds = array<i64: 8, 64>}, {pipeline_mode = #tpu.pipeline_mode<synchronous>, transform_indices = @transform_1, window_bounds = array<i64: 16, 64>}, {pipeline_mode = #tpu.pipeline_mode<synchronous>, transform_indices = @transform_2, window_bounds = array<i64: 64, 32>}, {pipeline_mode = #tpu.pipeline_mode<synchronous>, transform_indices = @transform_3, window_bounds = array<i64: 1, 32>}, {pipeline_mode = #tpu.pipeline_mode<synchronous>, transform_indices = @transform_4, window_bounds = array<i64: 1, 32>}, {transform_indices = @transform_5, window_bounds = array<i64: 8, 16>}, {transform_indices = @transform_6, window_bounds = array<i64: 8, 32>}]} {
    %c0 = arith.constant 0 : index
    %c0_0 = arith.constant 0 : index
    %0 = vector.load %arg3[%c0, %c0_0] : memref<64x32xf32, #tpu.memory_space<vmem>>, vector<64x32xf32>
    %1 = arith.truncf %0 : vector<64x32xf32> to vector<64x32xbf16>
    %c0_1 = arith.constant 0 : index
    %c0_2 = arith.constant 0 : index
    %2 = vector.load %arg1[%c0_1, %c0_2] : memref<8x64xf32, #tpu.memory_space<vmem>>, vector<8x64xf32>
    %3 = arith.truncf %2 : vector<8x64xf32> to vector<8x64xbf16>
    %c0_3 = arith.constant 0 : index
    %c0_4 = arith.constant 0 : index
    %4 = vector.load %arg2[%c0_3, %c0_4] : memref<16x64xf32, #tpu.memory_space<vmem>>, vector<16x64xf32>
    %5 = arith.truncf %4 : vector<16x64xf32> to vector<16x64xbf16>
    %cst = arith.constant dense<0.000000e+00> : vector<16x32xf32>
    %6 = tpu.matmul %5, %1, %cst {dimension_numbers = #tpu.dot_dimension_numbers<[1], [0], [0], [1], [0, 0, 1, 1], [], []>} : vector<16x64xbf16>, vector<64x32xbf16>, vector<16x32xf32> -> vector<16x32xf32>
    %cst_5 = arith.constant dense<0.000000e+00> : vector<8x32xf32>
    %7 = tpu.matmul %3, %1, %cst_5 {dimension_numbers = #tpu.dot_dimension_numbers<[1], [0], [0], [1], [0, 0, 1, 1], [], []>} : vector<8x64xbf16>, vector<64x32xbf16>, vector<8x32xf32> -> vector<8x32xf32>
    %c0_6 = arith.constant 0 : index
    %c0_7 = arith.constant 0 : index
    %8 = vector.load %arg4[%c0_6, %c0_7] : memref<1x32xf32, #tpu.memory_space<vmem>>, vector<1x32xf32>
    %c0_8 = arith.constant 0 : index
    %c0_9 = arith.constant 0 : index
    %9 = vector.load %arg5[%c0_8, %c0_9] : memref<1x32xf32, #tpu.memory_space<vmem>>, vector<1x32xf32>
    %cst_10 = arith.constant dense<0.000000e+00> : vector<8x1xf32>
    %10 = tpu.matmul %7, %8, %cst_10 {dimension_numbers = #tpu.dot_dimension_numbers<[1], [1], [0], [0], [0, 0, 1, 0], [], []>} : vector<8x32xf32>, vector<1x32xf32>, vector<8x1xf32> -> vector<8x1xf32>
    %cst_11 = arith.constant dense<0.000000e+00> : vector<1x16xf32>
    %11 = tpu.matmul %9, %6, %cst_11 {dimension_numbers = #tpu.dot_dimension_numbers<[1], [1], [0], [0], [0, 0, 1, 0], [], []>} : vector<1x32xf32>, vector<16x32xf32>, vector<1x16xf32> -> vector<1x16xf32>
    %c0_12 = arith.constant 0 : index
    %c0_13 = arith.constant 0 : index
    %12 = vector.load %arg6[%c0_12, %c0_13] : memref<8x16xbf16, #tpu.memory_space<vmem>>, vector<8x16xbf16>
    %cst_14 = arith.constant 0.000000e+00 : bf16
    %13 = vector.broadcast %cst_14 : bf16 to vector<8x16xbf16>
    %14 = arith.cmpf ogt, %12, %13 : vector<8x16xbf16>
    %cst_15 = arith.constant 0.000000e+00 : f32
    %cst_16 = arith.constant -9.000000e+15 : f32
    %15 = vector.broadcast %cst_15 : f32 to vector<8x16xf32>
    %16 = vector.broadcast %cst_16 : f32 to vector<8x16xf32>
    %17 = arith.select %14, %15, %16 : vector<8x16xi1>, vector<8x16xf32>
    %18 = arith.truncf %6 : vector<16x32xf32> to vector<16x32xbf16>
    %19 = vector.broadcast %10 : vector<8x1xf32> to vector<8x16xf32>
    %20 = vector.broadcast %11 : vector<1x16xf32> to vector<8x16xf32>
    %21 = arith.addf %19, %20 : vector<8x16xf32>
    %cst_17 = arith.constant 2.000000e-01 : f32
    %22 = vector.broadcast %cst_17 : f32 to vector<8x16xf32>
    %23 = arith.mulf %22, %21 : vector<8x16xf32>
    %24 = arith.maximumf %21, %23 : vector<8x16xf32>
    %25 = arith.addf %24, %17 : vector<8x16xf32>
    %cst_18 = arith.constant dense<0xFF800000> : vector<8xf32>
    %26 = vector.multi_reduction <maximumf>, %25, %cst_18 [1] : vector<8x16xf32> to vector<8xf32>
    %27 = vector.shape_cast %26 : vector<8xf32> to vector<8x1xf32>
    %28 = vector.broadcast %27 : vector<8x1xf32> to vector<8x16xf32>
    %29 = arith.subf %25, %28 : vector<8x16xf32>
    %30 = math.exp %29 : vector<8x16xf32>
    %cst_19 = arith.constant dense<0.000000e+00> : vector<8xf32>
    %31 = vector.multi_reduction <add>, %30, %cst_19 [1] : vector<8x16xf32> to vector<8xf32>
    %32 = vector.shape_cast %31 : vector<8xf32> to vector<8x1xf32>
    %33 = tpu.reciprocal %32 {approx = true} : vector<8x1xf32> -> vector<8x1xf32>
    %34 = vector.broadcast %33 : vector<8x1xf32> to vector<8x16xf32>
    %35 = arith.mulf %30, %34 : vector<8x16xf32>
    %36 = arith.truncf %35 : vector<8x16xf32> to vector<8x16xbf16>
    %cst_20 = arith.constant dense<0.000000e+00> : vector<8x32xf32>
    %37 = tpu.matmul %36, %18, %cst_20 {dimension_numbers = #tpu.dot_dimension_numbers<[1], [0], [0], [1], [0, 0, 1, 1], [], []>} : vector<8x16xbf16>, vector<16x32xbf16>, vector<8x32xf32> -> vector<8x32xf32>
    %cst_21 = arith.constant 0.000000e+00 : f32
    %38 = vector.broadcast %cst_21 : f32 to vector<8x32xf32>
    %39 = arith.cmpf ogt, %37, %38 : vector<8x32xf32>
    %40 = math.exp %37 : vector<8x32xf32>
    %cst_22 = arith.constant 1.000000e+00 : f32
    %41 = vector.broadcast %cst_22 : f32 to vector<8x32xf32>
    %42 = arith.subf %40, %41 : vector<8x32xf32>
    %43 = arith.select %39, %37, %42 : vector<8x32xi1>, vector<8x32xf32>
    %c0_23 = arith.constant 0 : index
    %c0_24 = arith.constant 0 : index
    %44 = vector.load %arg7[%c0_23, %c0_24] : memref<8x32xf32, #tpu.memory_space<vmem>>, vector<8x32xf32>
    tpu.vector_store %arg7[%c0_23, %c0_24], %43 {strides = array<i32>} : memref<8x32xf32, #tpu.memory_space<vmem>>, vector<8x32xf32>,
    return
  }
  func.func @transform_0(%arg0: i32) -> (i32, i32) {
    %c0_i32 = arith.constant 0 : i32
    %c0_i32_0 = arith.constant 0 : i32
    return %arg0, %c0_i32 : i32, i32
  }
  func.func @transform_1(%arg0: i32) -> (i32, i32) {
    %c0_i32 = arith.constant 0 : i32
    %c0_i32_0 = arith.constant 0 : i32
    %c0_i32_1 = arith.constant 0 : i32
    return %c0_i32, %c0_i32_0 : i32, i32
  }
  func.func @transform_2(%arg0: i32) -> (i32, i32) {
    %c0_i32 = arith.constant 0 : i32
    %c0_i32_0 = arith.constant 0 : i32
    %c0_i32_1 = arith.constant 0 : i32
    return %c0_i32, %c0_i32_0 : i32, i32
  }
  func.func @transform_3(%arg0: i32) -> (i32, i32) {
    %c0_i32 = arith.constant 0 : i32
    %c0_i32_0 = arith.constant 0 : i32
    %c0_i32_1 = arith.constant 0 : i32
    return %c0_i32, %c0_i32_0 : i32, i32
  }
  func.func @transform_4(%arg0: i32) -> (i32, i32) {
    %c0_i32 = arith.constant 0 : i32
    %c0_i32_0 = arith.constant 0 : i32
    %c0_i32_1 = arith.constant 0 : i32
    return %c0_i32, %c0_i32_0 : i32, i32
  }
  func.func @transform_5(%arg0: i32) -> (i32, i32) {
    %c0_i32 = arith.constant 0 : i32
    %c0_i32_0 = arith.constant 0 : i32
    return %arg0, %c0_i32 : i32, i32
  }
  func.func @transform_6(%arg0: i32) -> (i32, i32) {
    %c0_i32 = arith.constant 0 : i32
    %c0_i32_0 = arith.constant 0 : i32
    return %arg0, %c0_i32 : i32, i32
  }
}

module attributes {stable_mosaic.version = 11 : i64} {
  func.func @_tat_score_kernel(%arg0: memref<8x8x32xf32, #tpu.memory_space<vmem>>, %arg1: memref<8x8xf32, #tpu.memory_space<vmem>>, %arg2: memref<8x32xf32, #tpu.memory_space<vmem>>, %arg3: memref<32x32xf32, #tpu.memory_space<vmem>>, %arg4: memref<1x32xf32, #tpu.memory_space<vmem>>, %arg5: memref<4x32xf32, #tpu.memory_space<vmem>>, %arg6: memref<4x32xf32, #tpu.memory_space<vmem>>, %arg7: memref<4x32xf32, #tpu.memory_space<vmem>>, %arg8: memref<4x32xf32, #tpu.memory_space<vmem>>, %arg9: memref<4x32xf32, #tpu.memory_space<vmem>>, %arg10: memref<4x32xf32, #tpu.memory_space<vmem>>) attributes {dimension_semantics = [], scalar_prefetch = 0 : i64, scratch_operands = 0 : i64, tpu.core_type = #tpu.core_type<tc>} {
    %c0 = arith.constant 0 : index
    %c0_0 = arith.constant 0 : index
    %c0_1 = arith.constant 0 : index
    %0 = vector.load %arg0[%c0, %c0_0, %c0_1] : memref<8x8x32xf32, #tpu.memory_space<vmem>>, vector<8x8x32xf32>
    %c0_2 = arith.constant 0 : index
    %c0_3 = arith.constant 0 : index
    %1 = vector.load %arg1[%c0_2, %c0_3] : memref<8x8xf32, #tpu.memory_space<vmem>>, vector<8x8xf32>
    %c0_4 = arith.constant 0 : index
    %c0_5 = arith.constant 0 : index
    %2 = vector.load %arg2[%c0_4, %c0_5] : memref<8x32xf32, #tpu.memory_space<vmem>>, vector<8x32xf32>
    %3 = vector.shape_cast %2 : vector<8x32xf32> to vector<8x1x32xf32>
    %4 = vector.broadcast %3 : vector<8x1x32xf32> to vector<8x8x32xf32>
    %5 = arith.mulf %0, %4 : vector<8x8x32xf32>
    %cst = arith.constant dense<0.000000e+00> : vector<8x8xf32>
    %6 = vector.multi_reduction <add>, %5, %cst [2] : vector<8x8x32xf32> to vector<8x8xf32>
    %cst_6 = arith.constant 0.000000e+00 : f32
    %7 = vector.broadcast %cst_6 : f32 to vector<8x8xf32>
    %8 = arith.cmpf ogt, %1, %7 : vector<8x8xf32>
    %cst_7 = arith.constant -9.000000e+15 : f32
    %9 = vector.broadcast %cst_7 : f32 to vector<8x8xf32>
    %10 = arith.select %8, %6, %9 : vector<8x8xi1>, vector<8x8xf32>
    %cst_8 = arith.constant dense<0xFF800000> : vector<8xf32>
    %11 = vector.multi_reduction <maximumf>, %10, %cst_8 [1] : vector<8x8xf32> to vector<8xf32>
    %12 = vector.shape_cast %11 : vector<8xf32> to vector<8x1xf32>
    %13 = vector.broadcast %12 : vector<8x1xf32> to vector<8x8xf32>
    %14 = arith.subf %10, %13 : vector<8x8xf32>
    %15 = math.exp %14 : vector<8x8xf32>
    %cst_9 = arith.constant dense<0.000000e+00> : vector<8xf32>
    %16 = vector.multi_reduction <add>, %15, %cst_9 [1] : vector<8x8xf32> to vector<8xf32>
    %17 = vector.shape_cast %16 : vector<8xf32> to vector<8x1xf32>
    %18 = tpu.reciprocal %17 {approx = true} : vector<8x1xf32> -> vector<8x1xf32>
    %19 = vector.broadcast %18 : vector<8x1xf32> to vector<8x8xf32>
    %20 = arith.mulf %15, %19 : vector<8x8xf32>
    %21 = vector.shape_cast %20 : vector<8x8xf32> to vector<8x8x1xf32>
    %22 = vector.broadcast %21 : vector<8x8x1xf32> to vector<8x8x32xf32>
    %23 = arith.mulf %22, %0 : vector<8x8x32xf32>
    %cst_10 = arith.constant dense<0.000000e+00> : vector<8x32xf32>
    %24 = vector.multi_reduction <add>, %23, %cst_10 [1] : vector<8x8x32xf32> to vector<8x32xf32>
    %25 = arith.truncf %24 : vector<8x32xf32> to vector<8x32xbf16>
    %c0_11 = arith.constant 0 : index
    %c0_12 = arith.constant 0 : index
    %26 = vector.load %arg3[%c0_11, %c0_12] : memref<32x32xf32, #tpu.memory_space<vmem>>, vector<32x32xf32>
    %27 = arith.truncf %26 : vector<32x32xf32> to vector<32x32xbf16>
    %cst_13 = arith.constant dense<0.000000e+00> : vector<8x32xf32>
    %28 = tpu.matmul %25, %27, %cst_13 {dimension_numbers = #tpu.dot_dimension_numbers<[1], [0], [0], [1], [0, 0, 1, 1], [], []>} : vector<8x32xbf16>, vector<32x32xbf16>, vector<8x32xf32> -> vector<8x32xf32>
    %c0_14 = arith.constant 0 : index
    %c0_15 = arith.constant 0 : index
    %29 = vector.load %arg4[%c0_14, %c0_15] : memref<1x32xf32, #tpu.memory_space<vmem>>, vector<1x32xf32>
    %30 = vector.broadcast %29 : vector<1x32xf32> to vector<8x32xf32>
    %31 = arith.addf %28, %30 : vector<8x32xf32>
    %32 = math.tanh %31 : vector<8x32xf32>
    %33 = vector.extract_strided_slice %32 {offsets = [0, 0], sizes = [4, 32], strides = [1, 1]} : vector<8x32xf32> to vector<4x32xf32>
    %34 = vector.extract_strided_slice %32 {offsets = [4, 0], sizes = [4, 32], strides = [1, 1]} : vector<8x32xf32> to vector<4x32xf32>
    %c0_16 = arith.constant 0 : index
    %c0_17 = arith.constant 0 : index
    %35 = vector.load %arg8[%c0_16, %c0_17] : memref<4x32xf32, #tpu.memory_space<vmem>>, vector<4x32xf32>
    %36 = arith.negf %35 : vector<4x32xf32>
    %37 = math.exp %36 : vector<4x32xf32>
    %cst_18 = arith.constant 1.000000e+00 : f32
    %38 = vector.broadcast %cst_18 : f32 to vector<4x32xf32>
    %39 = arith.addf %38, %37 : vector<4x32xf32>
    %40 = arith.divf %38, %39 : vector<4x32xf32>
    %c0_19 = arith.constant 0 : index
    %c0_20 = arith.constant 0 : index
    %41 = vector.load %arg9[%c0_19, %c0_20] : memref<4x32xf32, #tpu.memory_space<vmem>>, vector<4x32xf32>
    %42 = arith.negf %41 : vector<4x32xf32>
    %43 = math.exp %42 : vector<4x32xf32>
    %cst_21 = arith.constant 1.000000e+00 : f32
    %44 = vector.broadcast %cst_21 : f32 to vector<4x32xf32>
    %45 = arith.addf %44, %43 : vector<4x32xf32>
    %46 = arith.divf %44, %45 : vector<4x32xf32>
    %c0_22 = arith.constant 0 : index
    %c0_23 = arith.constant 0 : index
    %47 = vector.load %arg5[%c0_22, %c0_23] : memref<4x32xf32, #tpu.memory_space<vmem>>, vector<4x32xf32>
    %48 = arith.mulf %40, %47 : vector<4x32xf32>
    %cst_24 = arith.constant 1.000000e+00 : f32
    %49 = vector.broadcast %cst_24 : f32 to vector<4x32xf32>
    %50 = arith.subf %49, %40 : vector<4x32xf32>
    %51 = arith.mulf %50, %33 : vector<4x32xf32>
    %52 = arith.addf %48, %51 : vector<4x32xf32>
    %c0_25 = arith.constant 0 : index
    %c0_26 = arith.constant 0 : index
    %53 = vector.load %arg6[%c0_25, %c0_26] : memref<4x32xf32, #tpu.memory_space<vmem>>, vector<4x32xf32>
    %54 = arith.mulf %46, %53 : vector<4x32xf32>
    %cst_27 = arith.constant 1.000000e+00 : f32
    %55 = vector.broadcast %cst_27 : f32 to vector<4x32xf32>
    %56 = arith.subf %55, %46 : vector<4x32xf32>
    %57 = arith.mulf %56, %34 : vector<4x32xf32>
    %58 = arith.addf %54, %57 : vector<4x32xf32>
    %c0_28 = arith.constant 0 : index
    %c0_29 = arith.constant 0 : index
    %59 = vector.load %arg7[%c0_28, %c0_29] : memref<4x32xf32, #tpu.memory_space<vmem>>, vector<4x32xf32>
    %60 = arith.addf %52, %59 : vector<4x32xf32>
    %61 = arith.subf %60, %58 : vector<4x32xf32>
    %62 = math.absf %61 : vector<4x32xf32>
    %c0_30 = arith.constant 0 : index
    %c0_31 = arith.constant 0 : index
    %63 = vector.load %arg10[%c0_30, %c0_31] : memref<4x32xf32, #tpu.memory_space<vmem>>, vector<4x32xf32>
    tpu.vector_store %arg10[%c0_30, %c0_31], %62 {strides = array<i32>} : memref<4x32xf32, #tpu.memory_space<vmem>>, vector<4x32xf32>,
    return
  }
}

</mosaic_0001>

<bundles_post_ra>
// kernel: gata_forward.3
= control target key start
LH: loop header
LB: loop body
LE: loop exit
PB: predicated region body
PF: predicated region fallthrough
CT: control target
= control target key end

     0   :  { %s770_s21 = smov 0   ;;  %s846_s0 = inlined_call_operand.vmem [shape: f32[16,32], index: 0, kind: input, shape index: {}, may-alias: {0,1}]   ;;  %s847_s1 = inlined_call_operand.vmem [shape: f32[16,32], index: 1, kind: input, shape index: {}, may-alias: {0,1}]   ;;  %s848_s2 = inlined_call_operand.vmem [shape: f32[32,64], index: 2, kind: input, shape index: {}]   ;;  %s849_s3 = inlined_call_operand.vmem [shape: f32[4,64], index: 3, kind: input, shape index: {}]   ;;  %s850_s4 = inlined_call_operand.vmem [shape: f32[4,64], index: 4, kind: input, shape index: {}]   ;;  %s851_s5 = inlined_call_operand.vmem [shape: bf16[16,16], index: 5, kind: input, shape index: {}]   ;;  %s852_s6 = inlined_call_operand.vmem [shape: f32[16,64], index: 6, kind: output, shape index: {}]  }
   0x1 LB: > { %s643_s22 = sadd.s32 4294967295, %s722_s21   ;;  %p647_p0 = scmp.ge.s32.totalorder %s722_s21, 1  ;;  %s722_s21 = sphi %s770_s21, %s16_s21  }
   0x2   : > { %p220_p1 = scmp.lt.s32.totalorder %s722_s21, 3 }
   0x4   : > { %p221_p2 = pnand %p647_p0, %p220_p1 }
   0x5   : > { %p252_p3 = scmp.lt.s32.totalorder (!%p221_p2), %s643_s22, 1  ;;  %s729_s25 = smov (!%p221_p2), 96  }
   0x6   : > { %224 = sbr.rel (%p221_p2) target bundleno = 922 (0x39a), region = 44  ;;  %s730_s26 = smov (!%p221_p2), 112  }
   0x7   : > { %s731_s27 = smov (!%p221_p2), 80   ;;  %s732_s28 = smov (!%p221_p2), 16  }
   0x8   : > { %s733_s29 = smov (!%p221_p2), 32   ;;  %s734_s30 = smov (!%p221_p2), 48  }
   0xb   : > { %v267_v0 = vld [vmem:[%s848_s2 + $0x10] sm:$0xff]  ;;  %v268_v1 = vld [vmem:[%s848_s2 + $0x18] sm:$0xff]  ;;  %v265_v2 = vld [vmem:[%s848_s2] sm:$0xff]  ;;  %vm312_vm0 = vcmask 523264   ;;  %s854_s22 = smov (!%p252_p3, %s643_s22), 1  ;;  %vm276_vm1 = vcmask 261120  }
   0xc   : > { %v270_v3 = vpack.c.bf16 %v268_v1, %v267_v0  ;;  %v266_v4 = vld [vmem:[%s848_s2 + $0x8] sm:$0xff]  ;;  %v310_v5 = vld [vmem:[%s849_s3] sm:$0xf]  ;;  %s648_s13 = sshll.u32 %s854_s22, 3  ;;  %v724_v12 = vmov 3   ;;  %v725_v13 = vmov 1  }
   0xd   : > { %v269_v6 = vpack.c.bf16 %v266_v4, %v265_v2  ;;  %v273_v7 = vld [vmem:[%s847_s1] sm:$0xff]  ;;  %v274_v8 = vld [vmem:[%s847_s1 + $0x8] sm:$0xff]  ;;  %653 = vmatpush.xpose.msk.msra.mxu2 %vm312_vm0, %v310_v5  ;;  %s255_s16 = scalar_lea.vmem %s846_s0, %s648_s13  ;;  %689 = vset.pattern.permute.xlu1 %v724_v12  ;;  %v726_v25 = vmov 0   ;;  %v727_v26 = vmov 2   ;;  %s649_s19 = sshll.u32 %s854_s22, 2  ;;  %vm384_vm3 = vcmask 130048  }
   0xe   : > { %303 = vmatpush.bf16.msra.mxu1 %v270_v3  ;;  %286 = vmatpush.bf16.msra.mxu0 %v270_v3  ;;  %v271_v9 = vld [vmem:[%s255_s16] sm:$0xff]  ;;  %v275_v10 = vpack.c.bf16 %v274_v8, %v273_v7  ;;  %s259_s24 = scalar_lea.vmem %s851_s5, %s649_s19  ;;  %v728_v38 = vmov -9e+15   ;;  %s263_s9 = scalar_lea.vmem %s852_s6, %s648_s13  ;;  %vm474_vm8 = vcmask 261248   ;;  %vm525_vm9 = vcmask 392448  }
   0xf   : > { %v272_v11 = vpack.c.bf16 %v271_v9, %v271_v9  ;;  %687 = vset.pattern.permute.xlu0 %v725_v13  ;;  %v311_v23 = vld [vmem:[%s850_s4] sm:$0xf]  ;;  %vm576_vm10 = vcmask 523648  }
  0x10   : > { %v368_v28 = vld [vmem:[%s259_s24] sm:$0xf] }
  0x11   : > { %v369_v31 = vunpack.c.l.bf16 %v368_v28 }
  0x12   : > { %304 = vmatpush.bf16.msra.mxu1 %v269_v6  ;;  %287 = vmatpush.bf16.msra.mxu0 %v269_v6 }
  0x13   : > { %vm370_vm2 = vcmp.gt.f32.partialorder %v369_v31, 0.0 }
  0x14   : > { %v371_v39 = vsel %vm370_vm2, 0.0, %v728_v38 }
  0x15   : > { %652 = vmatmul.msk.bf16.vlgmr.msra.gmra.mxu1 %vm276_vm1, %v272_v11  ;;  %651 = vmatmul.msk.bf16.vlgmr.msra.gmra.mxu0 %vm276_vm1, %v275_v10 }
  0x92   : > { %v306_v14 = vpop.f32.mrf.mxu1  ;;  %v289_v15 = vpop.f32.mrf.mxu0 }
  0x93   : > { %654 = vmatmul.msk.f32.vlgmr.msra.gmra.mxu2 %vm312_vm0, %v306_v14  ;;  %v372_v16 = vpack.c.bf16 %v289_v15, %v289_v15 }
  0x95   : > { %v399_v19 = vunpack.c.l.b16 %v372_v16 }
  0x9a   : > { %v308_v17 = vpop.f32.mrf.mxu1  ;;  %v291_v18 = vpop.f32.mrf.mxu0 }
  0x9b   : > { %v373_v20 = vpack.c.bf16 %v291_v18, %v291_v18  ;;  %655 = vmatpush.xpose.msk.msra.mxu3 %vm312_vm0, %v291_v18 }
  0x9d   : > { %v400_v21 = vunpack.c.l.b16 %v373_v20 }
  0x9f   : > { %v810_v22 = vpack.c.b16 %v400_v21, %v399_v19  ;;  %656 = vmatpush.xpose.msk.msra.mxu3 %vm312_vm0, %v289_v15 }
  0xa1   : > { %413 = vmatpush.bf16.msrb.mxu2 %v810_v22 }
  0xa2   : > { %657 = vmatmul.msk.f32.vlgmr.msra.gmra.mxu3 %vm312_vm0, %v311_v23 }
 0x116   : > { %v336_v24 = vpop.f32.mrf.mxu2 }
 0x117   : > { %528 = vperm.xlu1 %689, %v336_v24   ;;  %426 = vperm.xlu0 %687, %v336_v24  }
 0x11f   : > { %690 = vset.pattern.permute.xlu1 %v726_v25  ;;  %688 = vset.pattern.permute.xlu0 %v727_v26 }
 0x120   : > { %376 = vperm.xlu1 %690, %v336_v24   ;;  %477 = vperm.xlu0 %688, %v336_v24  }
 0x125   : > { %v365_v27 = vpop.f32.mrf.mxu3 }
 0x126   : > { %v531_v29 = vperm.slane %v365_v27, 3  ;;  %v429_v30 = vperm.slane %v365_v27, 1  ;;  %v379_v44 = vperm.slane %v365_v27, 0  ;;  %v480_v45 = vperm.slane %v365_v27, 2 }
 0x128   : > { %691 = vset.pattern.permute.xlu0 %v724_v12 }
 0x189   : > { %v529_v32 = vpop.permute.xlu1 %528  ;;  %v427_v33 = vpop.permute.xlu0 %426 }
 0x18a   : > { %v532_v34 = vadd.f32 %v531_v29, %v529_v32  ;;  %v430_v35 = vadd.f32 %v429_v30, %v427_v33 }
 0x18c   : > { %v533_v36 = vmul.f32 0.2, %v532_v34  ;;  %v431_v37 = vmul.f32 0.2, %v430_v35 }
 0x18e   : > { %v534_v40 = vmax.f32 %v532_v34, %v533_v36  ;;  %v432_v41 = vmax.f32 %v430_v35, %v431_v37 }
 0x190   : > { %v535_v42 = vadd.f32 %v534_v40, %v371_v39  ;;  %v433_v43 = vadd.f32 %v432_v41, %v371_v39 }
 0x192   : > { %v377_v46 = vpop.permute.xlu1 %376  ;;  %v478_v47 = vpop.permute.xlu0 %477  ;;  %v536_v48 = vsel %vm384_vm3, %v535_v42, -inf  ;;  %v434_v49 = vsel %vm384_vm3, %v433_v43, -inf }
 0x193   : > { %v380_v50 = vadd.f32 %v379_v44, %v377_v46  ;;  %v481_v51 = vadd.f32 %v480_v45, %v478_v47  ;;  %537 = vmax.xlane.f32.xlu1 %v536_v48  ;;  %435 = vmax.xlane.f32.xlu2 %v434_v49 }
 0x195   : > { %v482_v52 = vmul.f32 0.2, %v481_v51  ;;  %v381_v53 = vmul.f32 0.2, %v380_v50 }
 0x197   : > { %v483_v54 = vmax.f32 %v481_v51, %v482_v52  ;;  %v382_v56 = vmax.f32 %v380_v50, %v381_v53 }
 0x199   : > { %v484_v55 = vadd.f32 %v483_v54, %v371_v39  ;;  %v383_v58 = vadd.f32 %v382_v56, %v371_v39 }
 0x19b   : > { %v485_v57 = vsel %vm384_vm3, %v484_v55, -inf  ;;  %v385_v59 = vsel %vm384_vm3, %v383_v58, -inf }
 0x19c   : > { %486 = vmax.xlane.f32.xlu2 %v485_v57 }
 0x1a4   : > { %386 = vmax.xlane.f32.xlu2 %v385_v59 }
 0x1ac   : > { %497 = vrot.lane.b32.xlu1 %v810_v22, %s729_s25 }
 0x1bc   : > { %446 = vrot.lane.b32.xlu2 %v810_v22, %s730_s26 }
 0x206   : > { %v436_v60 = vpop.xlane.xlu2 %435  ;;  %v538_v63 = vpop.xlane.xlu1 %537 }
 0x207   : > { %v437_v61 = vsub.f32 %v433_v43, %v436_v60  ;;  %v539_v3 = vsub.f32 %v535_v42, %v538_v63 }
 0x209   : > { %v438_v62 = vmul.f32 1.442695, %v437_v61  ;;  %v540_v6 = vmul.f32 1.442695, %v539_v3 }
 0x20b   : > { %692 = vpow2.f32 %v438_v62 }
 0x20f   : > { %v487_v0 = vpop.xlane.xlu2 %486 }
 0x210   : > { %v488_v1 = vsub.f32 %v484_v55, %v487_v0 }
 0x211   : > { %v693_v2 = vpop.eup %692 }
 0x212   : > { %v489_v4 = vmul.f32 1.442695, %v488_v1  ;;  %v440_v5 = vsel %vm384_vm3, %v693_v2, 0.0 }
 0x213   : > { %441 = vadd.xlane.f32.xlu0 %v440_v5 }
 0x214   : > { %694 = vpow2.f32 %v489_v4 }
 0x215   : > { %696 = vpow2.f32 %v540_v6 }
 0x217   : > { %v387_v7 = vpop.xlane.xlu2 %386 }
 0x218   : > { %v388_v8 = vsub.f32 %v383_v58, %v387_v7 }
 0x21a   : > { %v695_v9 = vpop.eup %694  ;;  %v389_v10 = vmul.f32 1.442695, %v388_v8 }
 0x21b   : > { %v491_v11 = vsel %vm384_vm3, %v695_v9, 0.0  ;;  %v697_v14 = vpop.eup %696 }
 0x21c   : > { %698 = vpow2.f32 %v389_v10  ;;  %492 = vadd.xlane.f32.xlu2 %v491_v11  ;;  %v542_v16 = vsel %vm384_vm3, %v697_v14, 0.0 }
 0x21e   : > { %v498_v12 = vpop.permute.xlu1 %497 }
 0x21f   : > { %510 = vmatpush.bf16.msrb.mxu0 %v498_v12  ;;  %v447_v13 = vpop.permute.xlu2 %446 }
 0x220   : > { %459 = vmatpush.bf16.msrb.mxu3 %v447_v13 }
 0x222   : > { %v699_v15 = vpop.eup %698 }
 0x223   : > { %v391_v17 = vsel %vm384_vm3, %v699_v15, 0.0 }
 0x224   : > { %543 = vadd.xlane.f32.xlu2 %v542_v16  ;;  %392 = vadd.xlane.f32.xlu0 %v391_v17 }
 0x23c   : > { %548 = vrot.lane.b32.xlu2 %v810_v22, %s731_s27 }
 0x286   : > { %v442_v18 = vpop.xlane.xlu0 %441 }
 0x287   : > { %700 = vrcp.f32 %v442_v18 }
 0x28d   : > { %v701_v19 = vpop.eup %700 }
 0x28e   : > { %v444_v20 = vmul.f32 %v701_v19, %v693_v2 }
 0x28f   : > { %v493_v21 = vpop.xlane.xlu2 %492 }
 0x290   : > { %702 = vrcp.f32 %v493_v21  ;;  %v445_v23 = vpack.c.bf16 %v444_v20, %v444_v20 }
 0x292   : > { %660 = vmatmul.msk.bf16.vlgmr.msrb.gmra.mxu3 %vm384_vm3, %v445_v23 }
 0x296   : > { %v703_v24 = vpop.eup %702 }
 0x297   : > { %v495_v25 = vmul.f32 %v703_v24, %v695_v9  ;;  %v544_v26 = vpop.xlane.xlu2 %543  ;;  %v393_v27 = vpop.xlane.xlu0 %392 }
 0x298   : > { %704 = vrcp.f32 %v544_v26 }
 0x299   : > { %706 = vrcp.f32 %v393_v27  ;;  %v496_v28 = vpack.c.bf16 %v495_v25, %v495_v25 }
 0x29b   : > { %662 = vmatmul.msk.bf16.vlgmr.msrb.gmra.mxu0 %vm384_vm3, %v496_v28 }
 0x29e   : > { %v705_v29 = vpop.eup %704 }
 0x29f   : > { %v707_v22 = vpop.eup %706  ;;  %v546_v30 = vmul.f32 %v705_v29, %v697_v14  ;;  %v549_v31 = vpop.permute.xlu2 %548 }
 0x2a0   : > { %v395_v32 = vmul.f32 %v707_v22, %v699_v15  ;;  %561 = vmatpush.bf16.msrb.mxu1 %v549_v31 }
 0x2a1   : > { %v547_v33 = vpack.c.bf16 %v546_v30, %v546_v30 }
 0x2a2   : > { %v396_v34 = vpack.c.bf16 %v395_v32, %v395_v32 }
 0x2a3   : > { %664 = vmatmul.msk.bf16.vlgmr.msrb.gmra.mxu1 %vm384_vm3, %v547_v33 }
 0x2a4   : > { %658 = vmatmul.msk.bf16.vlgmr.msrb.gmra.mxu2 %vm384_vm3, %v396_v34 }
 0x315   : > { %v461_v35 = vpop.f32.mrf.mxu3 }
 0x316   : > { %v466_v36 = vmul.f32 1.442695, %v461_v35  ;;  %vm465_vm4 = vcmp.gt.f32.partialorder %v461_v35, 0.0 }
 0x318   : > { %v512_v37 = vpop.f32.mrf.mxu0  ;;  %708 = vpow2.f32 %v466_v36 }
 0x319   : > { %v517_v38 = vmul.f32 1.442695, %v512_v37  ;;  %vm516_vm5 = vcmp.gt.f32.partialorder %v512_v37, 0.0 }
 0x31b   : > { %710 = vpow2.f32 %v517_v38 }
 0x31d   : > { %v463_v39 = vpop.f32.mrf.mxu3 }
 0x31e   : > { %v709_v40 = vpop.eup %708 }
 0x31f   : > { %v661_v41 = vadd.f32 -1.0, %v709_v40 }
 0x320   : > { %v514_v42 = vpop.f32.mrf.mxu0  ;;  %v563_v43 = vpop.f32.mrf.mxu1 }
 0x321   : > { %v711_v44 = vpop.eup %710  ;;  %v568_v45 = vmul.f32 1.442695, %v563_v43  ;;  %v469_v47 = vsel %vm465_vm4, %v461_v35, %v661_v41  ;;  %vm567_vm6 = vcmp.gt.f32.partialorder %v563_v43, 0.0 }
 0x322   : > { %v663_v46 = vadd.f32 -1.0, %v711_v44  ;;  %471 = vrot.lane.b32.xlu2 %v469_v47, %s732_s28 }
 0x323   : > { %712 = vpow2.f32 %v568_v45 }
 0x324   : > { %v520_v48 = vsel %vm516_vm5, %v512_v37, %v663_v46 }
 0x325   : > { %522 = vrot.lane.b32.xlu0 %v520_v48, %s733_s29 }
 0x327   : > { %v415_v49 = vpop.f32.mrf.mxu2 }
 0x328   : > { %v420_v50 = vmul.f32 1.442695, %v415_v49  ;;  %v565_v51 = vpop.f32.mrf.mxu1  ;;  %vm419_vm7 = vcmp.gt.f32.partialorder %v415_v49, 0.0 }
 0x329   : > { %v713_v52 = vpop.eup %712 }
 0x32a   : > { %v665_v53 = vadd.f32 -1.0, %v713_v52  ;;  %714 = vpow2.f32 %v420_v50 }
 0x32c   : > { %v571_v54 = vsel %vm567_vm6, %v563_v43, %v665_v53 }
 0x32d   : > { %573 = vrot.lane.b32.xlu2 %v571_v54, %s734_s30 }
 0x32f   : > { %v417_v55 = vpop.f32.mrf.mxu2 }
 0x330   : > { %v715_v56 = vpop.eup %714 }
 0x331   : > { %v659_v57 = vadd.f32 -1.0, %v715_v56 }
 0x333   : > { %v423_v58 = vsel %vm419_vm7, %v415_v49, %v659_v57 }
 0x334   : > { %424 = vst.msk [vmem:[%s263_s9] sm:$0xff] %vm384_vm3, %v423_v58 }
 0x37c   : > { %v472_v59 = vpop.permute.xlu2 %471 }
 0x37d   : > { %475 = vst.msk [vmem:[%s263_s9] sm:$0xff] %vm474_vm8, %v472_v59 }
 0x387   : > { %v574_v61 = vpop.permute.xlu2 %573 }
 0x397   : > { %v523_v60 = vpop.permute.xlu0 %522 }
 0x398   : > { %526 = vst.msk [vmem:[%s263_s9] sm:$0xff] %vm525_vm9, %v523_v60 }
 0x399   : > { %577 = vst.msk [vmem:[%s263_s9] sm:$0xff] %vm576_vm10, %v574_v61 }
 0x39a PF: > { %s16_s21 = sadd.s32 1, %s722_s21  }
 0x39b   : > { %p13_p4 = scmp.ge.s32.totalorder %s16_s21, 4  }
 0x39d   :  { %15 = sbr.rel (!%p13_p4) target bundleno = 1 (0x1), region = 77 }

// kernel: gata_forward.4
= control target key start
LH: loop header
LB: loop body
LE: loop exit
PB: predicated region body
PF: predicated region fallthrough
CT: control target
= control target key end

     0   :  { %s542_s21 = smov 0   ;;  %s614_s0 = inlined_call_operand.vmem [shape: f32[16,64], index: 0, kind: input, shape index: {}, may-alias: {0,1}]   ;;  %s615_s1 = inlined_call_operand.vmem [shape: f32[16,64], index: 1, kind: input, shape index: {}, may-alias: {0,1}]   ;;  %s616_s2 = inlined_call_operand.vmem [shape: f32[64,32], index: 2, kind: input, shape index: {}]   ;;  %s617_s3 = inlined_call_operand.vmem [shape: f32[1,32], index: 3, kind: input, shape index: {}]   ;;  %s618_s4 = inlined_call_operand.vmem [shape: f32[1,32], index: 4, kind: input, shape index: {}]   ;;  %s619_s5 = inlined_call_operand.vmem [shape: bf16[16,16], index: 5, kind: input, shape index: {}]   ;;  %s620_s6 = inlined_call_operand.vmem [shape: f32[16,32], index: 6, kind: output, shape index: {}]  }
   0x1 LB: > { %s465_s22 = sadd.s32 4294967295, %s504_s21   ;;  %p469_p0 = scmp.ge.s32.totalorder %s504_s21, 1  ;;  %s504_s21 = sphi %s542_s21, %s16_s21  }
   0x2   : > { %p220_p1 = scmp.lt.s32.totalorder %s504_s21, 3 }
   0x4   : > { %p221_p2 = pnand %p469_p0, %p220_p1 }
   0x5   : > { %p252_p3 = scmp.lt.s32.totalorder (!%p221_p2), %s465_s22, 1 }
   0x6   : > { %224 = sbr.rel (%p221_p2) target bundleno = 713 (0x2c9), region = 44 }
   0xb   : > { %v271_v0 = vld [vmem:[%s616_s2 + $0x30] sm:$0xff]  ;;  %v272_v1 = vld [vmem:[%s616_s2 + $0x38] sm:$0xff]  ;;  %v269_v2 = vld [vmem:[%s616_s2 + $0x20] sm:$0xff]  ;;  %s622_s22 = smov (!%p252_p3, %s465_s22), 1  ;;  %vm282_vm0 = vcmask 523264   ;;  %vm322_vm1 = vcmask 261120  }
   0xc   : > { %v276_v3 = vpack.c.bf16 %v272_v1, %v271_v0  ;;  %v270_v4 = vld [vmem:[%s616_s2 + $0x28] sm:$0xff]  ;;  %v267_v6 = vld [vmem:[%s616_s2 + $0x10] sm:$0xff]  ;;  %v268_v7 = vld [vmem:[%s616_s2 + $0x18] sm:$0xff]  ;;  %s470_s11 = sshll.u32 %s622_s22, 3  ;;  %s471_s29 = sshll.u32 %s622_s22, 2  ;;  %vm365_vm3 = vcmask 130048  }
   0xd   : > { %v275_v5 = vpack.c.bf16 %v270_v4, %v269_v2  ;;  %v274_v8 = vpack.c.bf16 %v268_v7, %v267_v6  ;;  %v265_v9 = vld [vmem:[%s616_s2] sm:$0xff]  ;;  %v266_v10 = vld [vmem:[%s616_s2 + $0x8] sm:$0xff]  ;;  %s255_s18 = scalar_lea.vmem %s614_s0, %s470_s11  ;;  %s259_s8 = scalar_lea.vmem %s619_s5, %s471_s29  ;;  %v506_v33 = vmov -9e+15  }
   0xe   : > { %290 = vmatpush.bf16.msra.mxu0 %v276_v3  ;;  %307 = vmatpush.bf16.msra.mxu1 %v276_v3  ;;  %v273_v11 = vpack.c.bf16 %v266_v10, %v265_v9  ;;  %v279_v12 = vld [vmem:[%s615_s1] sm:$0xff]  ;;  %v280_v13 = vld [vmem:[%s615_s1 + $0x8] sm:$0xff]  ;;  %s263_s12 = scalar_lea.vmem %s620_s6, %s470_s11 }
   0xf   : > { %v277_v14 = vld [vmem:[%s255_s18] sm:$0xff]  ;;  %v281_v15 = vpack.c.bf16 %v280_v13, %v279_v12 }
  0x10   : > { %v278_v16 = vpack.c.bf16 %v277_v14, %v277_v14  ;;  %v491_v17 = vld [vmem:[%s617_s3] ss:$0 sm:$0xff] }
  0x11   : > { %v317_v25 = vld [vmem:[%s618_s4] sm:$0x1] }
  0x12   : > { %291 = vmatpush.bf16.msra.mxu0 %v275_v5  ;;  %308 = vmatpush.bf16.msra.mxu1 %v275_v5  ;;  %v355_v26 = vld [vmem:[%s259_s8] sm:$0xf] }
  0x13   : > { %v356_v27 = vunpack.c.l.bf16 %v355_v26 }
  0x15   : > { %vm357_vm2 = vcmp.gt.f32.partialorder %v356_v27, 0.0 }
  0x16   : > { %292 = vmatpush.bf16.msra.mxu0 %v274_v8  ;;  %309 = vmatpush.bf16.msra.mxu1 %v274_v8  ;;  %v358_v34 = vsel %vm357_vm2, 0.0, %v506_v33 }
  0x1a   : > { %293 = vmatpush.bf16.msra.mxu0 %v273_v11  ;;  %310 = vmatpush.bf16.msra.mxu1 %v273_v11 }
  0x1d   : > { %473 = vmatmul.msk.bf16.vlgmr.msra.gmra.mxu0 %vm282_vm0, %v281_v15  ;;  %474 = vmatmul.msk.bf16.vlgmr.msra.gmra.mxu1 %vm282_vm0, %v278_v16 }
  0x9a   : > { %v295_v18 = vpop.f32.mrf.mxu0  ;;  %v312_v19 = vpop.f32.mrf.mxu1 }
  0x9b   : > { %v321_v20 = vmul.f32 %v491_v17, %v312_v19 }
  0x9d   : > { %v323_v21 = vsel %vm322_vm1, %v321_v20, 0.0 }
  0x9e   : > { %324 = vadd.xlane.f32.xlu0 %v323_v21 }
  0xa2   : > { %v297_v22 = vpop.f32.mrf.mxu0  ;;  %v314_v23 = vpop.f32.mrf.mxu1 }
  0xa3   : > { %475 = vmatpush.xpose.msk.msra.mxu2 %vm322_vm1, %v297_v22  ;;  %v359_v24 = vpack.c.bf16 %v297_v22, %v295_v18 }
  0xa5   : > { %388 = vmatpush.bf16.msra.mxu3 %v359_v24 }
  0xa7   : > { %476 = vmatpush.xpose.msk.msra.mxu2 %vm322_vm1, %v295_v18 }
  0xaa   : > { %477 = vmatmul.msk.f32.vlgmr.msra.gmra.mxu2 %vm322_vm1, %v317_v25 }
 0x111   : > { %v325_v29 = vpop.xlane.xlu0 %324 }
 0x12d   : > { %v352_v28 = vpop.f32.mrf.mxu2 }
 0x12e   : > { %v360_v30 = vperm.slane %v352_v28, 0 }
 0x130   : > { %v361_v31 = vadd.f32 %v360_v30, %v325_v29 }
 0x132   : > { %v362_v32 = vmul.f32 0.2, %v361_v31 }
 0x134   : > { %v363_v35 = vmax.f32 %v361_v31, %v362_v32 }
 0x136   : > { %v364_v36 = vadd.f32 %v363_v35, %v358_v34 }
 0x138   : > { %v366_v37 = vsel %vm365_vm3, %v364_v36, -inf }
 0x139   : > { %367 = vmax.xlane.f32.xlu0 %v366_v37 }
 0x1ac   : > { %v368_v38 = vpop.xlane.xlu0 %367 }
 0x1ad   : > { %v369_v39 = vsub.f32 %v364_v36, %v368_v38 }
 0x1af   : > { %v370_v40 = vmul.f32 1.442695, %v369_v39 }
 0x1b1   : > { %492 = vpow2.f32 %v370_v40 }
 0x1b7   : > { %v493_v41 = vpop.eup %492 }
 0x1b8   : > { %v372_v42 = vsel %vm365_vm3, %v493_v41, 0.0 }
 0x1b9   : > { %373 = vadd.xlane.f32.xlu1 %v372_v42 }
 0x22c   : > { %v374_v43 = vpop.xlane.xlu1 %373 }
 0x22d   : > { %494 = vrcp.f32 %v374_v43 }
 0x233   : > { %v495_v44 = vpop.eup %494 }
 0x234   : > { %v376_v45 = vmul.f32 %v495_v44, %v493_v41 }
 0x236   : > { %v377_v46 = vpack.c.bf16 %v376_v45, %v376_v45 }
 0x238   : > { %478 = vmatmul.msk.bf16.vlgmr.msra.gmra.mxu3 %vm365_vm3, %v377_v46 }
 0x2bb   : > { %v390_v47 = vpop.f32.mrf.mxu3 }
 0x2bc   : > { %v395_v48 = vmul.f32 1.442695, %v390_v47  ;;  %vm394_vm4 = vcmp.gt.f32.partialorder %v390_v47, 0.0 }
 0x2be   : > { %496 = vpow2.f32 %v395_v48 }
 0x2c3   : > { %v392_v49 = vpop.f32.mrf.mxu3 }
 0x2c4   : > { %v497_v50 = vpop.eup %496 }
 0x2c5   : > { %v479_v51 = vadd.f32 -1.0, %v497_v50 }
 0x2c7   : > { %v398_v52 = vsel %vm394_vm4, %v390_v47, %v479_v51 }
 0x2c8   : > { %399 = vst.msk [vmem:[%s263_s12] sm:$0xff] %vm322_vm1, %v398_v52 }
 0x2c9 PF: > { %s16_s21 = sadd.s32 1, %s504_s21  }
 0x2ca   : > { %p13_p4 = scmp.ge.s32.totalorder %s16_s21, 4  }
 0x2cc   :  { %15 = sbr.rel (!%p13_p4) target bundleno = 1 (0x1), region = 77 }

// kernel: gata_forward.5
= control target key start
LH: loop header
LB: loop body
LE: loop exit
PB: predicated region body
PF: predicated region fallthrough
CT: control target
= control target key end

     0   :  { %vm79_vm0 = vcmask 261120   ;;  %s635_s0 = inlined_call_operand.vmem [shape: f32[8,8,32], index: 0, kind: input, shape index: {}]   ;;  %s636_s1 = inlined_call_operand.vmem [shape: f32[8,8], index: 1, kind: input, shape index: {}]   ;;  %s637_s2 = inlined_call_operand.vmem [shape: f32[8,32], index: 2, kind: input, shape index: {}]   ;;  %s638_s3 = inlined_call_operand.vmem [shape: f32[32,32], index: 3, kind: input, shape index: {}]   ;;  %s639_s4 = inlined_call_operand.vmem [shape: f32[1,32], index: 4, kind: input, shape index: {}]   ;;  %s640_s5 = inlined_call_operand.vmem [shape: f32[4,32], index: 5, kind: input, shape index: {}]   ;;  %s641_s6 = inlined_call_operand.vmem [shape: f32[4,32], index: 6, kind: input, shape index: {}]   ;;  %s642_s7 = inlined_call_operand.vmem [shape: f32[4,32], index: 7, kind: input, shape index: {}]   ;;  %s643_s8 = inlined_call_operand.vmem [shape: f32[4,32], index: 8, kind: input, shape index: {}]   ;;  %s644_s9 = inlined_call_operand.vmem [shape: f32[4,32], index: 9, kind: input, shape index: {}]   ;;  %s645_s10 = inlined_call_operand.hbm [shape: f32[4,32], index: 10, kind: output, shape index: {}]  }
   0x1   :  { %v512_v0 = vld [vmem:[%s635_s0] sm:$0xff]  ;;  %v520_v6 = vld [vmem:[%s635_s0 + $0x10] sm:$0xff]  ;;  %v531_v14 = vld [vmem:[%s635_s0 + $0x8] sm:$0xff] }
   0x2   :  { %v46_v1 = vld [vmem:[%s637_s2] sm:$0xff] }
   0x3   :  { %v55_v2 = vperm.slane %v46_v1, 0  ;;  %v49_v3 = vrot.slane %v46_v1, 2  ;;  %v51_v4 = vrot.slane %v46_v1, 4  ;;  %v48_v5 = vrot.slane %v46_v1, 1  ;;  %v525_v7 = vld [vmem:[%s635_s0 + $0x20] sm:$0xff] }
   0x4   :  { %v50_v8 = vrot.slane %v46_v1, 3  ;;  %v52_v9 = vrot.slane %v46_v1, 5 }
   0x5   :  { %v71_v10 = vmul.f32 %v55_v2, %v512_v0  ;;  %v57_v11 = vperm.slane %v49_v3, 0  ;;  %v59_v12 = vperm.slane %v51_v4, 0  ;;  %v56_v13 = vperm.slane %v48_v5, 0 }
   0x6   :  { %v58_v15 = vperm.slane %v50_v8, 0 }
   0x7   :  { %15 = vsyncpa [#allocation3], 0  ;;  %v80_v16 = vsel %vm79_vm0, %v71_v10, 0.0  ;;  %v73_v17 = vmul.f32 %v57_v11, %v520_v6  ;;  %v75_v18 = vmul.f32 %v59_v12, %v525_v7  ;;  %v60_v19 = vperm.slane %v52_v9, 0  ;;  %v539_v20 = vld [vmem:[%s635_s0 + $0x18] sm:$0xff]  ;;  %v544_v21 = vld [vmem:[%s635_s0 + $0x28] sm:$0xff] }
   0x8   :  { %81 = vadd.xlane.f32.xlu0 %v80_v16  ;;  %v72_v24 = vmul.f32 %v56_v13, %v531_v14  ;;  %v53_v25 = vrot.slane %v46_v1, 6  ;;  %v74_v26 = vmul.f32 %v58_v15, %v539_v20  ;;  %v54_v28 = vrot.slane %v46_v1, 7  ;;  %v555_v31 = vld [vmem:[%s635_s0 + $0x30] sm:$0xff]  ;;  %v562_v35 = vld [vmem:[%s635_s0 + $0x38] sm:$0xff]  ;;  %v45_v59 = vld [vmem:[%s636_s1] sm:$0xff] }
   0x9   :  { %v86_v22 = vsel %vm79_vm0, %v73_v17, 0.0  ;;  %v92_v23 = vsel %vm79_vm0, %v75_v18, 0.0  ;;  %v76_v27 = vmul.f32 %v60_v19, %v544_v21  ;;  %v113_v41 = vlaneseq }
   0xa   :  { %87 = vadd.xlane.f32.xlu1 %v86_v22  ;;  %93 = vadd.xlane.f32.xlu2 %v92_v23  ;;  %v83_v29 = vsel %vm79_vm0, %v72_v24, 0.0  ;;  %v61_v30 = vperm.slane %v53_v25, 0  ;;  %v89_v32 = vsel %vm79_vm0, %v74_v26, 0.0  ;;  %v62_v34 = vperm.slane %v54_v28, 0 }
   0xb   :  { %v95_v33 = vsel %vm79_vm0, %v76_v27, 0.0  ;;  %v114_v44 = vand.u32 127, %v113_v41  ;;  %vm123_vm1 = vcmask 1041409   ;;  %vm125_vm2 = vcmask 1042434  }
   0xc   :  { %v77_v36 = vmul.f32 %v61_v30, %v555_v31  ;;  %v78_v37 = vmul.f32 %v62_v34, %v562_v35  ;;  %vm127_vm3 = vcmask 1043459   ;;  %vm129_vm4 = vcmask 1044484  }
   0xd   :  { %vm131_vm5 = vcmask 1045509   ;;  %vm133_vm6 = vcmask 1046534   ;;  %vm135_vm7 = vcmask 1047559   ;;  %vm104_vm8 = vcmp.gt.f32.partialorder %v45_v59, 0.0 }
   0xe   :  { %v98_v38 = vsel %vm79_vm0, %v77_v36, 0.0  ;;  %v101_v39 = vsel %vm79_vm0, %v78_v37, 0.0  ;;  %vm139_vm9 = vcmask 64512   ;;  %v153_v12 = vshrl.u32 %v113_v41, 7 }
  0x10   :  { %84 = vadd.xlane.f32.xlu0 %v83_v29  ;;  %410 = vset.pattern.permute.xlu2 %v153_v12 }
  0x11   :  { %411 = vset.pattern.permute.xlu0 %v153_v12  ;;  %409 = vset.pattern.permute.xlu1 %v153_v12 }
  0x12   :  { %90 = vadd.xlane.f32.xlu1 %v89_v32  ;;  %96 = vadd.xlane.f32.xlu2 %v95_v33 }
  0x18   :  { %99 = vadd.xlane.f32.xlu0 %v98_v38  ;;  %v281_v38 = vld [vmem:[%s638_s3 + $0x10] sm:$0xff] }
  0x1a   :  { %102 = vadd.xlane.f32.xlu1 %v101_v39  ;;  %v282_v39 = vld [vmem:[%s638_s3 + $0x18] sm:$0xff] }
  0x7b   :  { %v82_v40 = vpop.xlane.xlu0 %81 }
  0x7c   :  { %v115_v46 = vperm.slane %v82_v40, %v114_v44 }
  0x7d   :  { %v88_v42 = vpop.xlane.xlu1 %87  ;;  %v94_v43 = vpop.xlane.xlu2 %93 }
  0x7e   :  { %v117_v48 = vperm.slane %v88_v42, %v114_v44  ;;  %v119_v54 = vperm.slane %v94_v43, %v114_v44  ;;  %v284_v42 = vpack.c.bf16 %v282_v39, %v281_v38 }
  0x80   :  { %322 = vmatpush.bf16.msra.mxu0 %v284_v42 }
  0x83   :  { %v85_v45 = vpop.xlane.xlu0 %84 }
  0x84   :  { %v116_v47 = vperm.slane %v85_v45, %v114_v44 }
  0x85   :  { %v91_v49 = vpop.xlane.xlu1 %90  ;;  %v97_v52 = vpop.xlane.xlu2 %96 }
  0x86   :  { %v124_v50 = vsel %vm123_vm1, %v116_v47, %v115_v46  ;;  %v118_v51 = vperm.slane %v91_v49, %v114_v44  ;;  %v120_v56 = vperm.slane %v97_v52, %v114_v44  ;;  %v280_v49 = vld [vmem:[%s638_s3 + $0x8] sm:$0xff] }
  0x87   :  { %v126_v53 = vsel %vm125_vm2, %v117_v48, %v124_v50  ;;  %v279_v48 = vld [vmem:[%s638_s3] sm:$0xff] }
  0x88   :  { %v128_v55 = vsel %vm127_vm3, %v118_v51, %v126_v53  ;;  %v283_v52 = vpack.c.bf16 %v280_v49, %v279_v48 }
  0x89   :  { %v130_v57 = vsel %vm129_vm4, %v119_v54, %v128_v55 }
  0x8a   :  { %v132_v61 = vsel %vm131_vm5, %v120_v56, %v130_v57  ;;  %323 = vmatpush.bf16.msra.mxu0 %v283_v52 }
  0x8b   :  { %v100_v58 = vpop.xlane.xlu0 %99 }
  0x8c   :  { %v121_v60 = vperm.slane %v100_v58, %v114_v44 }
  0x8d   :  { %v103_v62 = vpop.xlane.xlu1 %102 }
  0x8e   :  { %v122_v63 = vperm.slane %v103_v62, %v114_v44  ;;  %v134_v1 = vsel %vm133_vm6, %v121_v60, %v132_v61 }
  0x90   :  { %v136_v2 = vsel %vm135_vm7, %v122_v63, %v134_v1 }
  0x91   :  { %v138_v3 = vsel %vm104_vm8, %v136_v2, -9e+15 }
  0x92   :  { %v140_v4 = vsel %vm139_vm9, %v138_v3, -inf }
  0x93   :  { %141 = vmax.xlane.f32.xlu2 %v140_v4 }
 0x106   :  { %v142_v5 = vpop.xlane.xlu2 %141 }
 0x107   :  { %v143_v8 = vsub.f32 %v138_v3, %v142_v5 }
 0x109   :  { %v144_v9 = vmul.f32 1.442695, %v143_v8 }
 0x10b   :  { %413 = vpow2.f32 %v144_v9 }
 0x111   :  { %v414_v10 = vpop.eup %413 }
 0x112   :  { %v146_v11 = vsel %vm139_vm9, %v414_v10, 0.0 }
 0x113   :  { %147 = vadd.xlane.f32.xlu0 %v146_v11 }
 0x186   :  { %v148_v13 = vpop.xlane.xlu0 %147 }
 0x187   :  { %415 = vrcp.f32 %v148_v13 }
 0x18d   :  { %v416_v15 = vpop.eup %415 }
 0x18e   :  { %v150_v16 = vmul.f32 %v416_v15, %v414_v10 }
 0x190   :  { %v165_v17 = vperm.slane %v150_v16, 2  ;;  %v158_v18 = vperm.slane %v150_v16, 1  ;;  %v151_v19 = vperm.slane %v150_v16, 0  ;;  %v172_v22 = vperm.slane %v150_v16, 3 }
 0x191   :  { %v179_v23 = vperm.slane %v150_v16, 4  ;;  %v186_v24 = vperm.slane %v150_v16, 5  ;;  %v193_v25 = vperm.slane %v150_v16, 6  ;;  %v200_v26 = vperm.slane %v150_v16, 7 }
 0x192   :  { %170 = vperm.xlu0 %411, %v165_v17   ;;  %163 = vperm.xlu2 %410, %v158_v18  }
 0x193   :  { %156 = vperm.xlu1 %409, %v151_v19  }
 0x19a   :  { %177 = vperm.xlu2 %410, %v172_v22  }
 0x19b   :  { %184 = vperm.xlu1 %409, %v179_v23  }
 0x1a2   :  { %191 = vperm.xlu2 %410, %v186_v24  }
 0x1a3   :  { %198 = vperm.xlu1 %409, %v193_v25  }
 0x1aa   :  { %205 = vperm.xlu2 %410, %v200_v26  }
 0x1ec   :  { %v164_v27 = vpop.permute.xlu2 %163 }
 0x1ed   :  { %v208_v29 = vmul.f32 %v164_v27, %v531_v14 }
 0x1ef   :  { %v222_v32 = vsel %vm79_vm0, %v208_v29, 0.0 }
 0x1f0   :  { %v223_v34 = vrot.slane %v222_v32, 4 }
 0x1f2   :  { %v224_v40 = vadd.f32 %v223_v34, %v222_v32 }
 0x1f4   :  { %v178_v28 = vpop.permute.xlu2 %177 }
 0x1f5   :  { %v210_v33 = vmul.f32 %v178_v28, %v539_v20 }
 0x1f7   :  { %v236_v36 = vsel %vm79_vm0, %v210_v33, 0.0 }
 0x1f8   :  { %v237_v45 = vrot.slane %v236_v36, 4 }
 0x1fa   :  { %v238_v53 = vadd.f32 %v237_v45, %v236_v36 }
 0x1fc   :  { %v192_v30 = vpop.permute.xlu2 %191  ;;  %v239_v62 = vrot.slane %v238_v53, 2 }
 0x1fd   :  { %v212_v37 = vmul.f32 %v192_v30, %v544_v21 }
 0x1fe   :  { %v240_v12 = vadd.f32 %v239_v62, %v238_v53  ;;  %v350_v62 = vld [vmem:[%s644_s9] sm:$0xf] }
 0x1ff   :  { %v250_v46 = vsel %vm79_vm0, %v212_v37, 0.0 }
 0x200   :  { %v251_v54 = vrot.slane %v250_v46, 4  ;;  %v241_v24 = vrot.slane %v240_v12, 1 }
 0x202   :  { %v252_v63 = vadd.f32 %v251_v54, %v250_v46  ;;  %v242_v36 = vadd.f32 %v241_v24, %v240_v12 }
 0x204   :  { %v171_v14 = vpop.permute.xlu0 %170  ;;  %v206_v41 = vpop.permute.xlu2 %205  ;;  %v253_v13 = vrot.slane %v252_v63, 2 }
 0x205   :  { %v209_v43 = vmul.f32 %v171_v14, %v520_v6  ;;  %v214_v20 = vmul.f32 %v206_v41, %v562_v35  ;;  %v157_v44 = vpop.permute.xlu1 %156  ;;  %v225_v6 = vrot.slane %v224_v40, 2 }
 0x206   :  { %v207_v21 = vmul.f32 %v157_v44, %v512_v0  ;;  %v254_v25 = vadd.f32 %v253_v13, %v252_v63  ;;  %v274_v44 = vpack.c.bf16 %v242_v36, %v242_v36 }
 0x207   :  { %v229_v47 = vsel %vm79_vm0, %v209_v43, 0.0  ;;  %v264_v51 = vsel %vm79_vm0, %v214_v20, 0.0  ;;  %v226_v57 = vadd.f32 %v225_v6, %v224_v40 }
 0x208   :  { %v230_v50 = vrot.slane %v229_v47, 4  ;;  %v215_v35 = vsel %vm79_vm0, %v207_v21, 0.0  ;;  %v265_v59 = vrot.slane %v264_v51, 4  ;;  %v255_v37 = vrot.slane %v254_v25, 1 }
 0x209   :  { %v216_v0 = vrot.slane %v215_v35, 4  ;;  %v227_v4 = vrot.slane %v226_v57, 1  ;;  %v300_v6 = vunpack.c.l.b16 %v274_v44 }
 0x20a   :  { %v231_v55 = vadd.f32 %v230_v50, %v229_v47  ;;  %v266_v5 = vadd.f32 %v265_v59, %v264_v51 }
 0x20b   :  { %v217_v56 = vadd.f32 %v216_v0, %v215_v35  ;;  %v228_v17 = vadd.f32 %v227_v4, %v226_v57 }
 0x20c   :  { %v232_v58 = vrot.slane %v231_v55, 2  ;;  %v267_v18 = vrot.slane %v266_v5, 2 }
 0x20d   :  { %v218_v60 = vrot.slane %v217_v56, 2  ;;  %v185_v61 = vpop.permute.xlu1 %184  ;;  %v272_v28 = vpack.c.bf16 %v228_v17, %v228_v17 }
 0x20e   :  { %v233_v1 = vadd.f32 %v232_v58, %v231_v55  ;;  %v211_v2 = vmul.f32 %v185_v61, %v525_v7  ;;  %v268_v29 = vadd.f32 %v267_v18, %v266_v5  ;;  %v330_v61 = vld [vmem:[%s643_s8] sm:$0xf] }
 0x20f   :  { %v219_v3 = vadd.f32 %v218_v60, %v217_v56  ;;  %v298_v14 = vunpack.c.l.b16 %v272_v28  ;;  %v406_v63 = vmul.f32 -1.442695, %v330_v61 }
 0x210   :  { %v243_v8 = vsel %vm79_vm0, %v211_v2, 0.0  ;;  %v234_v9 = vrot.slane %v233_v1, 1  ;;  %v269_v41 = vrot.slane %v268_v29, 1 }
 0x211   :  { %v220_v10 = vrot.slane %v219_v3, 1  ;;  %v244_v11 = vrot.slane %v243_v8, 4  ;;  %417 = vpow2.f32 %v406_v63 }
 0x212   :  { %v235_v19 = vadd.f32 %v234_v9, %v233_v1  ;;  %v270_v46 = vadd.f32 %v269_v41, %v268_v29  ;;  %v407_v1 = vmul.f32 -1.442695, %v350_v62 }
 0x213   :  { %v221_v15 = vadd.f32 %v220_v10, %v219_v3  ;;  %v245_v16 = vadd.f32 %v244_v11, %v243_v8 }
 0x214   :  { %v273_v32 = vpack.c.bf16 %v235_v19, %v235_v19  ;;  %v278_v51 = vpack.c.bf16 %v270_v46, %v270_v46  ;;  %419 = vpow2.f32 %v407_v1 }
 0x215   :  { %v246_v22 = vrot.slane %v245_v16, 2  ;;  %v199_v23 = vpop.permute.xlu1 %198  ;;  %v271_v7 = vpack.c.bf16 %v221_v15, %v221_v15 }
 0x216   :  { %v213_v26 = vmul.f32 %v199_v23, %v555_v31  ;;  %v299_v42 = vunpack.c.l.b16 %v273_v32  ;;  %v256_v31 = vadd.f32 %v255_v37, %v254_v25  ;;  %v304_v56 = vunpack.c.l.b16 %v278_v51  ;;  %v375_v37 = vld [vmem:[%s641_s6] sm:$0xf]  ;;  %s396_s6 = sshll.u32 %s645_s10, 4  ;;  %s397_s6 = int_to_ptr.hbm [resolvable:$true] %s396_s6 }
 0x217   :  { %v247_v27 = vadd.f32 %v246_v22, %v245_v16  ;;  %v297_v38 = vunpack.c.l.b16 %v271_v7  ;;  %v418_v2 = vpop.eup %417  ;;  %v412_v22 = vld [vmem:[%s639_s4] ss:$0 sm:$0xff] }
 0x218   :  { %v257_v30 = vsel %vm79_vm0, %v213_v26, 0.0  ;;  %v276_v50 = vpack.c.bf16 %v256_v31, %v256_v31  ;;  %v334_v4 = vadd.f32 1.0, %v418_v2 }
 0x219   :  { %v248_v33 = vrot.slane %v247_v27, 1  ;;  %v258_v34 = vrot.slane %v257_v30, 4  ;;  %v305_v45 = vsel %vm123_vm1, %v298_v14, %v297_v38 }
 0x21a   :  { %v306_v47 = vsel %vm125_vm2, %v299_v42, %v305_v45  ;;  %v302_v54 = vunpack.c.l.b16 %v276_v50  ;;  %v420_v3 = vpop.eup %419  ;;  %421 = vrcp.f32 %v334_v4  ;;  %vm340_vm10 = vweird.f32 %v334_v4 }
 0x21b   :  { %v249_v39 = vadd.f32 %v248_v33, %v247_v27  ;;  %v259_v40 = vadd.f32 %v258_v34, %v257_v30  ;;  %v307_v0 = vsel %vm127_vm3, %v300_v6, %v306_v47  ;;  %v354_v5 = vadd.f32 1.0, %v420_v3  ;;  %v370_v34 = vld [vmem:[%s640_s5] sm:$0xf]  ;;  %s453_s5 = smov [#allocation2]  }
 0x21c   :  { %v346_v17 = vand.u32 2147483648, %v334_v4  ;;  %v344_v19 = vand.u32 2147483647, %v334_v4  ;;  %s394_s25 = sshll.u32 %s453_s5, 4  ;;  %vm387_vm2 = vcmask 257024   ;;  %s395_s25 = int_to_ptr.vmem [resolvable:$true] %s394_s25 }
 0x21d   :  { %v275_v43 = vpack.c.bf16 %v249_v39, %v249_v39  ;;  %v260_v20 = vrot.slane %v259_v40, 2  ;;  %423 = vrcp.f32 %v354_v5  ;;  %vm360_vm12 = vweird.f32 %v354_v5 }
 0x21e   :  { %v366_v23 = vand.u32 2147483648, %v354_v5  ;;  %v364_v25 = vand.u32 2147483647, %v354_v5  ;;  %v347_v7 = vor.u32 1.1754944e-38, %v346_v17 }
 0x21f   :  { %v261_v21 = vadd.f32 %v260_v20, %v259_v40  ;;  %v301_v48 = vunpack.c.l.b16 %v275_v43  ;;  %v383_v20 = vld [vmem:[%s642_s7] sm:$0xf] }
 0x220   :  { %v422_v8 = vpop.eup %421  ;;  %v367_v29 = vor.u32 1.1754944e-38, %v366_v23  ;;  %vm365_vm1 = vcmp.eq.f32.partialorder %v364_v25, 8.507059e+37 }
 0x221   :  { %v262_v49 = vrot.slane %v261_v21, 1  ;;  %v308_v53 = vsel %vm129_vm4, %v301_v48, %v307_v0  ;;  %v336_v10 = vmul.f32 %v422_v8, %v334_v4  ;;  %vm341_vm11 = vweird.f32 %v422_v8 }
 0x222   :  { %v309_v57 = vsel %vm131_vm5, %v302_v54, %v308_v53  ;;  %vm342_vm14 = vmor %vm340_vm10, %vm341_vm11 }
 0x223   :  { %v263_v35 = vadd.f32 %v262_v49, %v261_v21  ;;  %v424_v9 = vpop.eup %423  ;;  %v337_v12 = vsub.f32 1.0, %v336_v10 }
 0x224   :  { %v356_v11 = vmul.f32 %v424_v9, %v354_v5  ;;  %vm361_vm13 = vweird.f32 %v424_v9 }
 0x225   :  { %v277_v52 = vpack.c.bf16 %v263_v35, %v263_v35  ;;  %v338_v15 = vmul.f32 %v422_v8, %v337_v12  ;;  %vm362_vm15 = vmor %vm360_vm12, %vm361_vm13 }
 0x226   :  { %v357_v13 = vsub.f32 1.0, %v356_v11 }
 0x227   :  { %v303_v55 = vunpack.c.l.b16 %v277_v52  ;;  %v339_v18 = vadd.f32 %v422_v8, %v338_v15 }
 0x228   :  { %v358_v16 = vmul.f32 %v424_v9, %v357_v13 }
 0x229   :  { %v310_v58 = vsel %vm133_vm6, %v303_v55, %v309_v57  ;;  %v343_v27 = vsel %vm342_vm14, %v422_v8, %v339_v18 }
 0x22a   :  { %v311_v59 = vsel %vm135_vm7, %v304_v56, %v310_v58  ;;  %v359_v24 = vadd.f32 %v424_v9, %v358_v16 }
 0x22b   :  { %v312_v60 = vpack.c.b16 %v311_v59, %v311_v59 }
 0x22c   :  { %v363_v30 = vsel %vm362_vm15, %v424_v9, %v359_v24 }
 0x22d   :  { %405 = vmatmul.msk.bf16.vlgmr.msra.gmra.mxu0 %vm79_vm0, %v312_v60  ;;  %vm345_vm0 = vcmp.eq.f32.partialorder %v344_v19, 8.507059e+37  ;;  %v368_v33 = vsel %vm365_vm1, %v367_v29, %v363_v30 }
 0x22e   :  { %v348_v32 = vsel %vm345_vm0, %v347_v7, %v343_v27  ;;  %v377_v40 = vsub.f32 1.0, %v368_v33  ;;  %v376_v43 = vmul.f32 %v375_v37, %v368_v33 }
 0x22f   :  { %v372_v36 = vsub.f32 1.0, %v348_v32  ;;  %v371_v39 = vmul.f32 %v370_v34, %v348_v32 }
 0x2aa   :  { %v325_v26 = vpop.f32.mrf.mxu0 }
 0x2ab   :  { %v326_v28 = vadd.f32 %v412_v22, %v325_v26 }
 0x2ad   :  { %425 = vtanh.f32 %v326_v28 }
 0x2b2   :  { %v327_v38 = vpop.f32.mrf.mxu0 }
 0x2b3   :  { %v426_v14 = vpop.eup %425 }
 0x2b4   :  { %v373_v41 = vmul.f32 %v426_v14, %v372_v36  ;;  %v379_v42 = vrot.slane %v426_v14, 4 }
 0x2b6   :  { %v374_v44 = vadd.f32 %v373_v41, %v371_v39  ;;  %v381_v31 = vmul.f32 %v379_v42, %v377_v40 }
 0x2b8   :  { %v382_v45 = vadd.f32 %v381_v31, %v376_v43  ;;  %v384_v21 = vadd.f32 %v383_v20, %v374_v44 }
 0x2ba   :  { %v385_v46 = vsub.f32 %v384_v21, %v382_v45 }
 0x2bc   :  { %v386_v47 = vand.u32 2147483647, %v385_v46 }
 0x2be   :  { %388 = vst.msk [vmem:[#allocation2] sm:$0xf] %vm387_vm2, %v386_v47 }
 0x2bf   :  { %399 = dma.vmem_to_hbm [thread:$0]  %s395_s25, 64, %s397_s6, [#allocation3]  }
 0x2c0   :  { %451 = dma.done.wait [#allocation3], 64  }
 0x2c1   :  { %452 = vsyncadd [#allocation3], 4294967232 }
 0x2c2   :  { %404 = vsyncpa [#allocation3], 1 }

</bundles_post_ra>
